<compile_context>
chip_gen: v7x
topology: tpu7x:2x2x1
jax: 0.10.0
libtpu: 0.0.40
codegen_flags: <defaults>
</compile_context>

<pallas_src>
import functools

import jax
import jax.numpy as jnp
from jax import lax
from jax.experimental import pallas as pl
from jax.experimental.pallas import tpu as pltpu


def bottleneck_kernel(x_ref, w1_ref, w2_ref, w3_ref, b1_ref, b2_ref, b3_ref, o_ref):
    """One batch element per grid step.

    x_ref : (1, H, W, Cin)       input tile (channels padded to a multiple of 128)
    w1_ref: (Cin, P)    bf16     1x1 conv weight, BN1 scale folded in
    w2_ref: (3, 3P, P)  bf16     3x3 conv weight: [ky][kx*P + pin, pout], BN2 folded
    w3_ref: (P, Cout)   bf16     1x1 conv weight, BN3 scale folded in
    b*_ref: (1, C)      f32      folded BN biases
    o_ref : (1, H, W, Cout)      output tile
    """
    H, W = x_ref.shape[1], x_ref.shape[2]
    Cin = x_ref.shape[3]
    P = w1_ref.shape[1]
    Cout = w3_ref.shape[1]

    # ---- conv1 (1x1, BN1 scale folded into w1) + bias + ReLU ----
    x2d = x_ref[0].reshape(H * W, Cin)
    out1 = jnp.dot(x2d.astype(jnp.bfloat16), w1_ref[...],
                   preferred_element_type=jnp.float32)
    out1 = jnp.maximum(out1 + b1_ref[...], 0.0)              # (H*W, P) f32

    # ---- conv2 (3x3, stride=1, pad=1) ----
    # Zero-pad along H only: H is the leading (non-vreg) axis, so every slice
    # below is aligned.  The kx shifts are done with a sublane roll + edge mask
    # instead of misaligned W-offset slices.
    act = out1.reshape(H, W, P)                               # f32
    zrow = jnp.zeros((1, W, P), jnp.float32)
    padded = jnp.concatenate([zrow, act, zrow], axis=0)       # (H+2, W, P) f32

    wcol = lax.broadcasted_iota(jnp.int32, padded.shape, 1)
    zero = jnp.zeros_like(padded)
    # left[h, w]  = padded[h, w-1]   (kx = 0 tap), wrapped column w=0 zeroed
    left = jnp.where(wcol == 0, zero, pltpu.roll(padded, 1, axis=1))
    # right[h, w] = padded[h, w+1]   (kx = 2 tap), wrapped column w=W-1 zeroed
    right = jnp.where(wcol == W - 1, zero, pltpu.roll(padded, W - 1, axis=1))

    left_b = left.astype(jnp.bfloat16)
    cent_b = padded.astype(jnp.bfloat16)
    right_b = right.astype(jnp.bfloat16)

    # Three accumulating dots, one per ky, each with K = 3P (lane-dense bf16).
    acc = jnp.zeros((H * W, P), jnp.float32)
    for ky in range(3):
        slab = jnp.concatenate(
            [left_b[ky:ky + H], cent_b[ky:ky + H], right_b[ky:ky + H]],
            axis=-1).reshape(H * W, 3 * P)
        acc = acc + jnp.dot(slab, w2_ref[ky], preferred_element_type=jnp.float32)
    out2 = jnp.maximum(acc + b2_ref[...], 0.0)                # (H*W, P) f32

    # ---- conv3 (1x1, BN3 scale folded into w3) + bias ----
    out3 = jnp.dot(out2.astype(jnp.bfloat16), w3_ref[...],
                   preferred_element_type=jnp.float32)
    out3 = out3 + b3_ref[...]                                 # (H*W, Cout) f32

    # ---- residual add + ReLU (identity path: downsample is None) ----
    res = x_ref[0].reshape(H * W, Cin).astype(jnp.float32)
    y = jnp.maximum(out3 + res, 0.0)
    o_ref[0] = y.reshape(H, W, Cout).astype(o_ref.dtype)


def _round_up(c, m=128):
    return ((c + m - 1) // m) * m


def prepare_params(w1_oihw, w2_oihw, w3_oihw, bn1, bn2, bn3, eps=1e-5):
    """Fold eval-mode BN into conv weights/biases; pad channels to multiples of 128.

    BN scales are folded in f32 first, then the weights are cast to bf16 (MXU
    operands); biases stay f32.
    """
    def fold(gamma, beta, mean, var):
        s = gamma / jnp.sqrt(var + eps)
        return s, beta - mean * s

    s1, b1 = fold(*bn1)
    s2, b2 = fold(*bn2)
    s3, b3 = fold(*bn3)

    P = w1_oihw.shape[0]
    Cin = w1_oihw.shape[1]
    Cout = w3_oihw.shape[0]
    assert Cout == Cin, "identity residual requires inplanes == planes * expansion"
    Pp, Cinp, Coutp = _round_up(P), _round_up(Cin), _round_up(Cout)

    # conv1: OIHW (P, Cin, 1, 1) -> (Cin, P)
    w1 = w1_oihw[:, :, 0, 0].T * s1[None, :]
    # conv2: OIHW (P, P, 3, 3) -> (ky, kx, Pin, Pout)
    w2 = jnp.transpose(w2_oihw, (2, 3, 1, 0)) * s2[None, None, None, :]
    # conv3: OIHW (Cout, P, 1, 1) -> (P, Cout)
    w3 = w3_oihw[:, :, 0, 0].T * s3[None, :]

    w1p = jnp.zeros((Cinp, Pp), jnp.float32).at[:Cin, :P].set(w1).astype(jnp.bfloat16)
    w2p = (jnp.zeros((3, 3, Pp, Pp), jnp.float32).at[:, :, :P, :P].set(w2)
           .reshape(3, 3 * Pp, Pp).astype(jnp.bfloat16))
    w3p = jnp.zeros((Pp, Coutp), jnp.float32).at[:P, :Cout].set(w3).astype(jnp.bfloat16)
    b1p = jnp.zeros((1, Pp), jnp.float32).at[0, :P].set(b1)
    b2p = jnp.zeros((1, Pp), jnp.float32).at[0, :P].set(b2)
    b3p = jnp.zeros((1, Coutp), jnp.float32).at[0, :Cout].set(b3)
    return (w1p, w2p, w3p, b1p, b2p, b3p), (Cin, Cout)


def _pick_vmem_limit_bytes():
    """Per-generation scoped-VMEM limit (v5e/v6e: 128 MiB physical, v7x: 64 MiB)."""
    cap = 128 * 1024 * 1024
    try:
        info = pltpu.get_tpu_info()
        cap = int(getattr(info, "vmem_capacity_bytes", cap))
    except Exception:
        pass
    # 3/4 of physical, capped at 100 MiB, floored at the 32 MiB default.
    return max(32 * 1024 * 1024, min(cap * 3 // 4, 100 * 1024 * 1024))


def bottleneck_forward_nhwc(x_nhwc, params):
    """x_nhwc: (B, H, W, Cin). Returns (B, H, W, Cout_padded)."""
    w1, w2, w3, b1, b2, b3 = params
    B, H, W, Cin = x_nhwc.shape
    Cin_p, P_p = w1.shape
    Cout_p = w3.shape[1]
    assert Cout_p == Cin_p

    if Cin < Cin_p:  # lane-pad channels with zeros (zeros are preserved end-to-end)
        x_nhwc = jnp.pad(x_nhwc, ((0, 0), (0, 0), (0, 0), (0, Cin_p - Cin)))

    const = lambda shape: pl.BlockSpec(shape, lambda b: (0,) * len(shape))

    return pl.pallas_call(
        bottleneck_kernel,
        out_shape=jax.ShapeDtypeStruct((B, H, W, Cout_p), x_nhwc.dtype),
        grid_spec=pltpu.PrefetchScalarGridSpec(
            num_scalar_prefetch=0,
            grid=(B,),
            in_specs=[
                pl.BlockSpec((1, H, W, Cin_p), lambda b: (b, 0, 0, 0)),
                const((Cin_p, P_p)),           # w1 (BN1 folded, bf16)
                const((3, 3 * P_p, P_p)),      # w2 (BN2 folded, bf16, ky-major)
                const((P_p, Cout_p)),          # w3 (BN3 folded, bf16)
                const((1, P_p)),               # b1
                const((1, P_p)),               # b2
                const((1, Cout_p)),            # b3
            ],
            out_specs=pl.BlockSpec((1, H, W, Cout_p), lambda b: (b, 0, 0, 0)),
        ),
        compiler_params=pltpu.CompilerParams(
            dimension_semantics=("parallel",),
            vmem_limit_bytes=_pick_vmem_limit_bytes(),
        ),
    )(x_nhwc, w1, w2, w3, b1, b2, b3)


def bottleneck_forward(x_nchw, params, cout):
    """PyTorch-convention entry point: x_nchw (B, Cin, H, W) -> (B, Cout, H, W)."""
    x_nhwc = jnp.transpose(x_nchw, (0, 2, 3, 1))      # NCHW -> NHWC
    out = bottleneck_forward_nhwc(x_nhwc, params)
    out = out[..., :cout]                              # drop lane padding
    return jnp.transpose(out, (0, 3, 1, 2))            # NHWC -> NCHW


def make_raw_params(key, inplanes, planes):
    expansion = 4
    ks = jax.random.split(key, 6)
    w1_oihw = 0.1 * jax.random.normal(ks[0], (planes, inplanes, 1, 1), jnp.float32)
    w2_oihw = 0.1 * jax.random.normal(ks[1], (planes, planes, 3, 3), jnp.float32)
    w3_oihw = 0.1 * jax.random.normal(ks[2], (planes * expansion, planes, 1, 1), jnp.float32)

    def bn_params(k, c):
        k1, k2, k3, k4 = jax.random.split(k, 4)
        gamma = 0.5 + jax.random.uniform(k1, (c,), jnp.float32)
        beta = 0.1 * jax.random.normal(k2, (c,), jnp.float32)
        mean = 0.1 * jax.random.normal(k3, (c,), jnp.float32)
        var = 0.5 + jax.random.uniform(k4, (c,), jnp.float32)
        return gamma, beta, mean, var

    bn1 = bn_params(ks[3], planes)
    bn2 = bn_params(ks[4], planes)
    bn3 = bn_params(ks[5], planes * expansion)
    return w1_oihw, w2_oihw, w3_oihw, bn1, bn2, bn3


def reference_forward(x_nchw, raw):
    """Pure-JAX NCHW reference matching the PyTorch forward (eval-mode BN, f32)."""
    w1_oihw, w2_oihw, w3_oihw, bn1, bn2, bn3 = raw

    def conv(x, w, pad):
        return lax.conv_general_dilated(
            x, w, window_strides=(1, 1), padding=[(pad, pad), (pad, pad)],
            dimension_numbers=("NCHW", "OIHW", "NCHW"))

    def bn(x, p, eps=1e-5):
        gamma, beta, mean, var = p
        s = (gamma / jnp.sqrt(var + eps)).reshape(1, -1, 1, 1)
        b = (beta - mean * gamma / jnp.sqrt(var + eps)).reshape(1, -1, 1, 1)
        return x * s + b

    out = jnp.maximum(bn(conv(x_nchw, w1_oihw, 0), bn1), 0.0)
    out = jnp.maximum(bn(conv(out, w2_oihw, 1), bn2), 0.0)
    out = bn(conv(out, w3_oihw, 0), bn3)
    return jnp.maximum(out + x_nchw, 0.0)


if __name__ == "__main__":
    key = jax.random.PRNGKey(0)
    k_x, k_p = jax.random.split(key)

    B, planes = 2, 4
    inplanes = planes * 4          # downsample=None => inplanes == planes*expansion
    H = W = 16

    x = jax.random.normal(k_x, (B, inplanes, H, W), jnp.float32)
    raw = make_raw_params(k_p, inplanes, planes)
    params, (cin, cout) = prepare_params(*raw)

    fwd = jax.jit(functools.partial(bottleneck_forward, params=params, cout=cout))
    y = jax.block_until_ready(fwd(x))

    y_ref = reference_forward(x, raw)
    assert y.shape == y_ref.shape == (B, inplanes, H, W)
    err = jnp.max(jnp.abs(y - y_ref))
    # bf16 MXU operands: keep a slightly looser tolerance than the f32 version.
    assert jnp.allclose(y, y_ref, rtol=1e-2, atol=1e-2), f"max abs err {err}"

    print("KERNEL_OK")
</pallas_src>

<mosaic_0001>
module attributes {stable_mosaic.version = 11 : i64} {
  func.func @bottleneck_kernel(%arg0: i32, %arg1: memref<1x16x16x128xf32, #tpu.memory_space<vmem>>, %arg2: memref<128x128xbf16, #tpu.memory_space<vmem>>, %arg3: memref<3x384x128xbf16, #tpu.memory_space<vmem>>, %arg4: memref<128x128xbf16, #tpu.memory_space<vmem>>, %arg5: memref<1x128xf32, #tpu.memory_space<vmem>>, %arg6: memref<1x128xf32, #tpu.memory_space<vmem>>, %arg7: memref<1x128xf32, #tpu.memory_space<vmem>>, %arg8: memref<1x16x16x128xf32, #tpu.memory_space<vmem>>) attributes {dimension_semantics = [#tpu.dimension_semantics<parallel>], iteration_bounds = array<i64: 2>, scalar_prefetch = 0 : i64, scratch_operands = 0 : i64, tpu.core_type = #tpu.core_type<tc>, window_params = [{transform_indices = @transform_0, window_bounds = array<i64: 1, 16, 16, 128>}, {pipeline_mode = #tpu.pipeline_mode<synchronous>, transform_indices = @transform_1, window_bounds = array<i64: 128, 128>}, {pipeline_mode = #tpu.pipeline_mode<synchronous>, transform_indices = @transform_2, window_bounds = array<i64: 3, 384, 128>}, {pipeline_mode = #tpu.pipeline_mode<synchronous>, transform_indices = @transform_3, window_bounds = array<i64: 128, 128>}, {pipeline_mode = #tpu.pipeline_mode<synchronous>, transform_indices = @transform_4, window_bounds = array<i64: 1, 128>}, {pipeline_mode = #tpu.pipeline_mode<synchronous>, transform_indices = @transform_5, window_bounds = array<i64: 1, 128>}, {pipeline_mode = #tpu.pipeline_mode<synchronous>, transform_indices = @transform_6, window_bounds = array<i64: 1, 128>}, {transform_indices = @transform_7, window_bounds = array<i64: 1, 16, 16, 128>}]} {
    %c0 = arith.constant 0 : index
    %c0_0 = arith.constant 0 : index
    %c0_1 = arith.constant 0 : index
    %c0_2 = arith.constant 0 : index
    %0 = vector.load %arg1[%c0, %c0_0, %c0_1, %c0_2] : memref<1x16x16x128xf32, #tpu.memory_space<vmem>>, vector<1x16x16x128xf32>
    %1 = vector.shape_cast %0 : vector<1x16x16x128xf32> to vector<16x16x128xf32>
    %2 = vector.shape_cast %1 : vector<16x16x128xf32> to vector<256x128xf32>
    %3 = arith.truncf %2 : vector<256x128xf32> to vector<256x128xbf16>
    %c0_3 = arith.constant 0 : index
    %c0_4 = arith.constant 0 : index
    %4 = vector.load %arg2[%c0_3, %c0_4] : memref<128x128xbf16, #tpu.memory_space<vmem>>, vector<128x128xbf16>
    %cst = arith.constant dense<0.000000e+00> : vector<256x128xf32>
    %5 = tpu.matmul %3, %4, %cst {dimension_numbers = #tpu.dot_dimension_numbers<[1], [0], [0], [1], [0, 0, 1, 1], [], []>} : vector<256x128xbf16>, vector<128x128xbf16>, vector<256x128xf32> -> vector<256x128xf32>
    %c0_5 = arith.constant 0 : index
    %c0_6 = arith.constant 0 : index
    %6 = vector.load %arg5[%c0_5, %c0_6] : memref<1x128xf32, #tpu.memory_space<vmem>>, vector<1x128xf32>
    %7 = vector.broadcast %6 : vector<1x128xf32> to vector<256x128xf32>
    %8 = arith.addf %5, %7 : vector<256x128xf32>
    %cst_7 = arith.constant 0.000000e+00 : f32
    %9 = vector.broadcast %cst_7 : f32 to vector<256x128xf32>
    %10 = arith.maximumf %8, %9 : vector<256x128xf32>
    %11 = vector.shape_cast %10 : vector<256x128xf32> to vector<16x16x128xf32>
    %cst_8 = arith.constant 0.000000e+00 : f32
    %12 = vector.broadcast %cst_8 : f32 to vector<1x16x128xf32>
    %13 = tpu.concatenate %12, %11, %12 in 0 : vector<1x16x128xf32>, vector<16x16x128xf32>, vector<1x16x128xf32> -> vector<18x16x128xf32>
    %14 = tpu.iota {dimensions = array<i32: 1>} : vector<18x16x128xi32>
    %cst_9 = arith.constant 0.000000e+00 : f32
    %15 = vector.broadcast %cst_9 : f32 to vector<18x16x128xf32>
    %c0_i32 = arith.constant 0 : i32
    %16 = vector.broadcast %c0_i32 : i32 to vector<18x16x128xi32>
    %17 = arith.cmpi eq, %14, %16 : vector<18x16x128xi32>
    %c1_i32 = arith.constant 1 : i32
    %18 = tpu.dynamic_rotate %13 by %c1_i32 dim 1 : vector<18x16x128xf32>, i32 -> vector<18x16x128xf32>
    %19 = arith.select %17, %15, %18 : vector<18x16x128xi1>, vector<18x16x128xf32>
    %c15_i32 = arith.constant 15 : i32
    %20 = vector.broadcast %c15_i32 : i32 to vector<18x16x128xi32>
    %21 = arith.cmpi eq, %14, %20 : vector<18x16x128xi32>
    %c15_i32_10 = arith.constant 15 : i32
    %22 = tpu.dynamic_rotate %13 by %c15_i32_10 dim 1 : vector<18x16x128xf32>, i32 -> vector<18x16x128xf32>
    %23 = arith.select %21, %15, %22 : vector<18x16x128xi1>, vector<18x16x128xf32>
    %24 = arith.truncf %19 : vector<18x16x128xf32> to vector<18x16x128xbf16>
    %25 = arith.truncf %13 : vector<18x16x128xf32> to vector<18x16x128xbf16>
    %26 = arith.truncf %23 : vector<18x16x128xf32> to vector<18x16x128xbf16>
    %cst_11 = arith.constant 0.000000e+00 : f32
    %27 = vector.broadcast %cst_11 : f32 to vector<256x128xf32>
    %28 = vector.extract_strided_slice %24 {offsets = [0, 0, 0], sizes = [16, 16, 128], strides = [1, 1, 1]} : vector<18x16x128xbf16> to vector<16x16x128xbf16>
    %29 = vector.extract_strided_slice %25 {offsets = [0, 0, 0], sizes = [16, 16, 128], strides = [1, 1, 1]} : vector<18x16x128xbf16> to vector<16x16x128xbf16>
    %30 = vector.extract_strided_slice %26 {offsets = [0, 0, 0], sizes = [16, 16, 128], strides = [1, 1, 1]} : vector<18x16x128xbf16> to vector<16x16x128xbf16>
    %31 = tpu.concatenate %28, %29, %30 in 2 : vector<16x16x128xbf16>, vector<16x16x128xbf16>, vector<16x16x128xbf16> -> vector<16x16x384xbf16>
    %32 = vector.shape_cast %31 : vector<16x16x384xbf16> to vector<256x384xbf16>
    %c0_12 = arith.constant 0 : index
    %c0_13 = arith.constant 0 : index
    %c0_14 = arith.constant 0 : index
    %33 = vector.load %arg3[%c0_12, %c0_13, %c0_14] : memref<3x384x128xbf16, #tpu.memory_space<vmem>>, vector<1x384x128xbf16>
    %34 = vector.shape_cast %33 : vector<1x384x128xbf16> to vector<384x128xbf16>
    %cst_15 = arith.constant dense<0.000000e+00> : vector<256x128xf32>
    %35 = tpu.matmul %32, %34, %cst_15 {dimension_numbers = #tpu.dot_dimension_numbers<[1], [0], [0], [1], [0, 0, 1, 1], [], []>} : vector<256x384xbf16>, vector<384x128xbf16>, vector<256x128xf32> -> vector<256x128xf32>
    %36 = arith.addf %27, %35 : vector<256x128xf32>
    %37 = vector.extract_strided_slice %24 {offsets = [1, 0, 0], sizes = [16, 16, 128], strides = [1, 1, 1]} : vector<18x16x128xbf16> to vector<16x16x128xbf16>
    %38 = vector.extract_strided_slice %25 {offsets = [1, 0, 0], sizes = [16, 16, 128], strides = [1, 1, 1]} : vector<18x16x128xbf16> to vector<16x16x128xbf16>
    %39 = vector.extract_strided_slice %26 {offsets = [1, 0, 0], sizes = [16, 16, 128], strides = [1, 1, 1]} : vector<18x16x128xbf16> to vector<16x16x128xbf16>
    %40 = tpu.concatenate %37, %38, %39 in 2 : vector<16x16x128xbf16>, vector<16x16x128xbf16>, vector<16x16x128xbf16> -> vector<16x16x384xbf16>
    %41 = vector.shape_cast %40 : vector<16x16x384xbf16> to vector<256x384xbf16>
    %c1 = arith.constant 1 : index
    %c0_16 = arith.constant 0 : index
    %c0_17 = arith.constant 0 : index
    %42 = vector.load %arg3[%c1, %c0_16, %c0_17] : memref<3x384x128xbf16, #tpu.memory_space<vmem>>, vector<1x384x128xbf16>
    %43 = vector.shape_cast %42 : vector<1x384x128xbf16> to vector<384x128xbf16>
    %cst_18 = arith.constant dense<0.000000e+00> : vector<256x128xf32>
    %44 = tpu.matmul %41, %43, %cst_18 {dimension_numbers = #tpu.dot_dimension_numbers<[1], [0], [0], [1], [0, 0, 1, 1], [], []>} : vector<256x384xbf16>, vector<384x128xbf16>, vector<256x128xf32> -> vector<256x128xf32>
    %45 = arith.addf %36, %44 : vector<256x128xf32>
    %46 = vector.extract_strided_slice %24 {offsets = [2, 0, 0], sizes = [16, 16, 128], strides = [1, 1, 1]} : vector<18x16x128xbf16> to vector<16x16x128xbf16>
    %47 = vector.extract_strided_slice %25 {offsets = [2, 0, 0], sizes = [16, 16, 128], strides = [1, 1, 1]} : vector<18x16x128xbf16> to vector<16x16x128xbf16>
    %48 = vector.extract_strided_slice %26 {offsets = [2, 0, 0], sizes = [16, 16, 128], strides = [1, 1, 1]} : vector<18x16x128xbf16> to vector<16x16x128xbf16>
    %49 = tpu.concatenate %46, %47, %48 in 2 : vector<16x16x128xbf16>, vector<16x16x128xbf16>, vector<16x16x128xbf16> -> vector<16x16x384xbf16>
    %50 = vector.shape_cast %49 : vector<16x16x384xbf16> to vector<256x384xbf16>
    %c2 = arith.constant 2 : index
    %c0_19 = arith.constant 0 : index
    %c0_20 = arith.constant 0 : index
    %51 = vector.load %arg3[%c2, %c0_19, %c0_20] : memref<3x384x128xbf16, #tpu.memory_space<vmem>>, vector<1x384x128xbf16>
    %52 = vector.shape_cast %51 : vector<1x384x128xbf16> to vector<384x128xbf16>
    %cst_21 = arith.constant dense<0.000000e+00> : vector<256x128xf32>
    %53 = tpu.matmul %50, %52, %cst_21 {dimension_numbers = #tpu.dot_dimension_numbers<[1], [0], [0], [1], [0, 0, 1, 1], [], []>} : vector<256x384xbf16>, vector<384x128xbf16>, vector<256x128xf32> -> vector<256x128xf32>
    %54 = arith.addf %45, %53 : vector<256x128xf32>
    %c0_22 = arith.constant 0 : index
    %c0_23 = arith.constant 0 : index
    %55 = vector.load %arg6[%c0_22, %c0_23] : memref<1x128xf32, #tpu.memory_space<vmem>>, vector<1x128xf32>
    %56 = vector.broadcast %55 : vector<1x128xf32> to vector<256x128xf32>
    %57 = arith.addf %54, %56 : vector<256x128xf32>
    %cst_24 = arith.constant 0.000000e+00 : f32
    %58 = vector.broadcast %cst_24 : f32 to vector<256x128xf32>
    %59 = arith.maximumf %57, %58 : vector<256x128xf32>
    %60 = arith.truncf %59 : vector<256x128xf32> to vector<256x128xbf16>
    %c0_25 = arith.constant 0 : index
    %c0_26 = arith.constant 0 : index
    %61 = vector.load %arg4[%c0_25, %c0_26] : memref<128x128xbf16, #tpu.memory_space<vmem>>, vector<128x128xbf16>
    %cst_27 = arith.constant dense<0.000000e+00> : vector<256x128xf32>
    %62 = tpu.matmul %60, %61, %cst_27 {dimension_numbers = #tpu.dot_dimension_numbers<[1], [0], [0], [1], [0, 0, 1, 1], [], []>} : vector<256x128xbf16>, vector<128x128xbf16>, vector<256x128xf32> -> vector<256x128xf32>
    %c0_28 = arith.constant 0 : index
    %c0_29 = arith.constant 0 : index
    %63 = vector.load %arg7[%c0_28, %c0_29] : memref<1x128xf32, #tpu.memory_space<vmem>>, vector<1x128xf32>
    %64 = vector.broadcast %63 : vector<1x128xf32> to vector<256x128xf32>
    %65 = arith.addf %62, %64 : vector<256x128xf32>
    %c0_30 = arith.constant 0 : index
    %c0_31 = arith.constant 0 : index
    %c0_32 = arith.constant 0 : index
    %c0_33 = arith.constant 0 : index
    %66 = vector.load %arg1[%c0_30, %c0_31, %c0_32, %c0_33] : memref<1x16x16x128xf32, #tpu.memory_space<vmem>>, vector<1x16x16x128xf32>
    %67 = vector.shape_cast %66 : vector<1x16x16x128xf32> to vector<16x16x128xf32>
    %68 = vector.shape_cast %67 : vector<16x16x128xf32> to vector<256x128xf32>
    %69 = arith.addf %65, %68 : vector<256x128xf32>
    %cst_34 = arith.constant 0.000000e+00 : f32
    %70 = vector.broadcast %cst_34 : f32 to vector<256x128xf32>
    %71 = arith.maximumf %69, %70 : vector<256x128xf32>
    %72 = vector.shape_cast %71 : vector<256x128xf32> to vector<16x16x128xf32>
    %c0_35 = arith.constant 0 : index
    %c0_36 = arith.constant 0 : index
    %c0_37 = arith.constant 0 : index
    %c0_38 = arith.constant 0 : index
    %73 = vector.load %arg8[%c0_35, %c0_36, %c0_37, %c0_38] : memref<1x16x16x128xf32, #tpu.memory_space<vmem>>, vector<1x16x16x128xf32>
    %74 = vector.shape_cast %73 : vector<1x16x16x128xf32> to vector<16x16x128xf32>
    %75 = vector.shape_cast %72 : vector<16x16x128xf32> to vector<1x16x16x128xf32>
    tpu.vector_store %arg8[%c0_35, %c0_36, %c0_37, %c0_38], %75 {strides = array<i32>} : memref<1x16x16x128xf32, #tpu.memory_space<vmem>>, vector<1x16x16x128xf32>,
    return
  }
  func.func @transform_0(%arg0: i32) -> (i32, i32, i32, i32) {
    %c0_i32 = arith.constant 0 : i32
    %c0_i32_0 = arith.constant 0 : i32
    %c0_i32_1 = arith.constant 0 : i32
    %c0_i32_2 = arith.constant 0 : i32
    return %arg0, %c0_i32, %c0_i32_0, %c0_i32_1 : i32, i32, i32, i32
  }
  func.func @transform_1(%arg0: i32) -> (i32, i32) {
    %c0_i32 = arith.constant 0 : i32
    %c0_i32_0 = arith.constant 0 : i32
    %c0_i32_1 = arith.constant 0 : i32
    return %c0_i32, %c0_i32_0 : i32, i32
  }
  func.func @transform_2(%arg0: i32) -> (i32, i32, i32) {
    %c0_i32 = arith.constant 0 : i32
    %c0_i32_0 = arith.constant 0 : i32
    %c0_i32_1 = arith.constant 0 : i32
    %c0_i32_2 = arith.constant 0 : i32
    return %c0_i32, %c0_i32_0, %c0_i32_1 : i32, i32, i32
  }
  func.func @transform_3(%arg0: i32) -> (i32, i32) {
    %c0_i32 = arith.constant 0 : i32
    %c0_i32_0 = arith.constant 0 : i32
    %c0_i32_1 = arith.constant 0 : i32
    return %c0_i32, %c0_i32_0 : i32, i32
  }
  func.func @transform_4(%arg0: i32) -> (i32, i32) {
    %c0_i32 = arith.constant 0 : i32
    %c0_i32_0 = arith.constant 0 : i32
    %c0_i32_1 = arith.constant 0 : i32
    return %c0_i32, %c0_i32_0 : i32, i32
  }
  func.func @transform_5(%arg0: i32) -> (i32, i32) {
    %c0_i32 = arith.constant 0 : i32
    %c0_i32_0 = arith.constant 0 : i32
    %c0_i32_1 = arith.constant 0 : i32
    return %c0_i32, %c0_i32_0 : i32, i32
  }
  func.func @transform_6(%arg0: i32) -> (i32, i32) {
    %c0_i32 = arith.constant 0 : i32
    %c0_i32_0 = arith.constant 0 : i32
    %c0_i32_1 = arith.constant 0 : i32
    return %c0_i32, %c0_i32_0 : i32, i32
  }
  func.func @transform_7(%arg0: i32) -> (i32, i32, i32, i32) {
    %c0_i32 = arith.constant 0 : i32
    %c0_i32_0 = arith.constant 0 : i32
    %c0_i32_1 = arith.constant 0 : i32
    %c0_i32_2 = arith.constant 0 : i32
    return %arg0, %c0_i32, %c0_i32_0, %c0_i32_1 : i32, i32, i32, i32
  }
}

</mosaic_0001>

<bundles_post_ra>
// kernel: bottleneck_forward.1
= control target key start
LH: loop header
LB: loop body
LE: loop exit
PB: predicated region body
PF: predicated region fallthrough
CT: control target
= control target key end

     0   :  { %12 = vsyncpa [#allocation3], 0  ;;  %s6697_s0 = inlined_call_operand.hbm [shape: f32[2,16,16,128], index: 0, kind: input, shape index: {}]   ;;  %s6698_s1 = inlined_call_operand.hbm [shape: bf16[128,128], index: 1, kind: input, shape index: {}]   ;;  %s6699_s2 = inlined_call_operand.hbm [shape: bf16[3,384,128], index: 2, kind: input, shape index: {}]   ;;  %s6700_s3 = inlined_call_operand.hbm [shape: bf16[128,128], index: 3, kind: input, shape index: {}]   ;;  %s6701_s4 = inlined_call_operand.hbm [shape: f32[1,128], index: 4, kind: input, shape index: {}]   ;;  %s6702_s5 = inlined_call_operand.hbm [shape: f32[1,128], index: 5, kind: input, shape index: {}]   ;;  %s6703_s6 = inlined_call_operand.hbm [shape: f32[1,128], index: 6, kind: input, shape index: {}]   ;;  %s6704_s7 = inlined_call_operand.hbm [shape: f32[2,16,16,128], index: 7, kind: output, shape index: {}]  }
   0x1   :  { %14 = vsyncpa [#allocation3 + $0x1], 0 }
   0x2   :  { %15 = vsyncpa [#allocation6], 0 }
   0x3   :  { %16 = vsyncpa [#allocation9], 0 }
   0x4   :  { %17 = vsyncpa [#allocation12], 0 }
   0x5   :  { %18 = vsyncpa [#allocation4], 0 }
   0x6   :  { %20 = vsyncpa [#allocation4 + $0x1], 0  ;;  %s5012_s24 = smov 0   ;;  %s5014_s25 = smov 0  }
   0x7   :  { %s5016_s26 = smov 0   ;;  %s5018_s27 = smov 0  }
   0x8 LB: > { %s4956_s28 = smov [#allocation5]   ;;  %s5033_s30 = sadd.s32 4294967295, %s4954_s27   ;;  %s4954_s27 = sphi %s5018_s27, %s6798_s27   ;;  %s4950_s26 = sphi %s5016_s26, %s6797_s26   ;;  %s4946_s25 = sphi %s5014_s25, %s6796_s25   ;;  %s4942_s24 = sphi %s5012_s24, %s6795_s24  }
   0x9   : > { %s221_s29 = sshll.u32 %s4956_s28, 4  ;;  %p3083_p0 = scmp.ge.s32.totalorder %s4954_s27, 1  ;;  %s5038_s29 = int_to_ptr.vmem [resolvable:$true] %s221_s29 }
   0xa   : > { %p6705_p1 = scmp.eq.s32.totalorder %s5033_s30, 0  ;;  %p209_p2 = scmp.lt.s32.totalorder %s4954_s27, 3 }
   0xb   : > { %s4957_s9 = smov [#allocation8]   ;;  %s4958_s12 = smov [#allocation11]  }
   0xc   : > { %p5040_p3 = pnand %p3083_p0, %p209_p2  ;;  %s247_s10 = sshll.u32 %s4957_s9, 4  ;;  %s5053_s10 = int_to_ptr.vmem [resolvable:$true] %s247_s10 }
   0xd   : > { %s272_s13 = sshll.u32 %s4958_s12, 4  ;;  %s4678_s16 = scalar_lea.hbm %s6698_s1, 1024  ;;  %s5055_s13 = int_to_ptr.vmem [resolvable:$true] %s272_s13 }
   0xe   : > { %s6716_s8 = scalar_select %p5040_p3, 1, 0 }
   0xf   : > { %p4471_p5 = pneg %p5040_p3  ;;  %p4679_p7 = scmp.ne.s32.totalorder %s6698_s1, %s4678_s16 }
  0x10   : > { %p4685_p11 = scmp.lt.u32.totalorder %s4678_s16, %s6698_s1 }
  0x11   : > { %p5049_p6 = pnand %p4471_p5, %p6705_p1 }
  0x13   : > { %p5065_p8 = pneg %p5049_p6 }
  0x15   : > { %p4681_p9 = pnand %p5065_p8, %p4679_p7 }
  0x17   : > { %p4682_p10 = pneg %p4681_p9 }
  0x19   : > { %p4687_p12 = pnand %p4685_p11, %p4682_p10 }
  0x1b   : > { %4690 = shalt.err (!%p4687_p12)
}
  0x1c   : > { %s4691_s22 = scalar_lea.vmem %s5038_s29, 1024  ;;  %p4699_p5 = scmp.lt.s32.totalorder %s5038_s29, %s5038_s29 }
  0x1d   : > { %p4692_p13 = scmp.ne.s32.totalorder %s5038_s29, %s4691_s22  ;;  %p4700_p4 = scmp.lt.s32.totalorder %s4691_s22, %s4691_s22 }
  0x1f   : > { %p4694_p0 = pnand %p4692_p13, %p5065_p8  ;;  %p4701_p7 = por %p4700_p4, %p4699_p5 }
  0x21   : > { %p4695_p2 = pneg %p4694_p0 }
  0x23   : > { %p4702_p9 = pnand %p4701_p7, %p4695_p2 }
  0x25   : > { %4705 = shalt.err (!%p4702_p9)
}
  0x26   : > { %s4959_s23 = smov 64   ;;  %s4960_s28 = smov 4  }
  0x27   : > { %4474 = dma.hbm_to_vmem [thread:$0]  (!%p5049_p6), %s6698_s1, 1024, %s5038_s29, [#allocation6], %s4959_s23, %s4959_s23, %s4960_s28  }
  0x28   : > { %s4706_s16 = scalar_lea.hbm %s6700_s3, 1024 }
  0x29   : > { %p4707_p4 = scmp.ne.s32.totalorder %s6700_s3, %s4706_s16  ;;  %p4713_p12 = scmp.lt.u32.totalorder %s4706_s16, %s6700_s3 }
  0x2b   : > { %p4709_p10 = pnand %p4707_p4, %p5065_p8 }
  0x2d   : > { %p4710_p11 = pneg %p4709_p10 }
  0x2f   : > { %p4715_p13 = pnand %p4713_p12, %p4710_p11 }
  0x31   : > { %4718 = shalt.err (!%p4715_p13)
}
  0x32   : > { %s4719_s29 = scalar_lea.vmem %s5053_s10, 1024  ;;  %p4727_p7 = scmp.lt.s32.totalorder %s5053_s10, %s5053_s10 }
  0x33   : > { %p4720_p0 = scmp.ne.s32.totalorder %s5053_s10, %s4719_s29  ;;  %p4728_p9 = scmp.lt.s32.totalorder %s4719_s29, %s4719_s29 }
  0x35   : > { %p4722_p2 = pnand %p4720_p0, %p5065_p8  ;;  %p4729_p4 = por %p4728_p9, %p4727_p7 }
  0x37   : > { %p4723_p5 = pneg %p4722_p2 }
  0x39   : > { %p4730_p10 = pnand %p4729_p4, %p4723_p5 }
  0x3b   : > { %4733 = shalt.err (!%p4730_p10)
}
  0x3c   : > { %4480 = dma.hbm_to_vmem [thread:$0]  (!%p5049_p6), %s6700_s3, 1024, %s5053_s10, [#allocation9], %s4959_s23, %s4959_s23, %s4960_s28  }
  0x3d   : > { %s4734_s15 = scalar_lea.hbm %s6702_s5, 16 }
  0x3e   : > { %p4735_p11 = scmp.ne.s32.totalorder %s6702_s5, %s4734_s15  ;;  %p4741_p0 = scmp.lt.u32.totalorder %s4734_s15, %s6702_s5 }
  0x40   : > { %p4737_p12 = pnand %p4735_p11, %p5065_p8 }
  0x42   : > { %p4738_p13 = pneg %p4737_p12 }
  0x44   : > { %p4743_p2 = pnand %p4741_p0, %p4738_p13 }
  0x46   : > { %4746 = shalt.err (!%p4743_p2)
}
  0x47   : > { %s4747_s10 = scalar_lea.vmem %s5055_s13, 16  ;;  %s4754_s21 = scalar_lea.vmem %s5055_s13, 32 }
  0x48   : > { %p4748_p5 = scmp.ne.s32.totalorder %s5055_s13, %s4747_s10  ;;  %p4755_p4 = scmp.lt.s32.totalorder %s5055_s13, %s5055_s13 }
  0x49   : > { %p4756_p10 = scmp.lt.s32.totalorder %s4754_s21, %s4747_s10 }
  0x4a   : > { %p4750_p7 = pnand %p4748_p5, %p5065_p8 }
  0x4b   : > { %p4757_p11 = por %p4756_p10, %p4755_p4 }
  0x4c   : > { %p4751_p9 = pneg %p4750_p7 }
  0x4e   : > { %p4758_p12 = pnand %p4757_p11, %p4751_p9 }
  0x50   : > { %4761 = shalt.err (!%p4758_p12)
}
  0x51   : > { %4486 = dma.hbm_to_vmem [thread:$0]  (!%p5049_p6), %s6702_s5, 16, %s5055_s13, [#allocation12]  }
  0x52   : > { %s4961_s9 = smov [#allocation7]   ;;  %s4962_s14 = smov [#allocation10]  }
  0x53   : > { %s234_s12 = sshll.u32 %s4961_s9, 4  ;;  %s261_s15 = sshll.u32 %s4962_s14, 4  ;;  %s235_s12 = int_to_ptr.vmem [resolvable:$true] %s234_s12  ;;  %s262_s15 = int_to_ptr.vmem [resolvable:$true] %s261_s15 }
  0x54   : > { %s4762_s18 = scalar_lea.hbm %s6699_s2, 9216 }
  0x55   : > { %p4763_p13 = scmp.ne.s32.totalorder %s6699_s2, %s4762_s18  ;;  %p4769_p5 = scmp.lt.u32.totalorder %s4762_s18, %s6699_s2 }
  0x57   : > { %p4765_p0 = pnand %p4763_p13, %p5065_p8 }
  0x59   : > { %p4766_p2 = pneg %p4765_p0 }
  0x5b   : > { %p4771_p7 = pnand %p4769_p5, %p4766_p2 }
  0x5d   : > { %4774 = shalt.err (!%p4771_p7)
}
  0x5e   : > { %s4775_s13 = scalar_lea.vmem %s235_s12, 9216  ;;  %p4783_p11 = scmp.lt.s32.totalorder %s235_s12, %s235_s12 }
  0x5f   : > { %p4776_p9 = scmp.ne.s32.totalorder %s235_s12, %s4775_s13  ;;  %p4784_p12 = scmp.lt.s32.totalorder %s4775_s13, %s4775_s13 }
  0x61   : > { %p4778_p4 = pnand %p4776_p9, %p5065_p8  ;;  %p4785_p1 = por %p4784_p12, %p4783_p11 }
  0x63   : > { %p4779_p10 = pneg %p4778_p4 }
  0x65   : > { %p4786_p3 = pnand %p4785_p1, %p4779_p10 }
  0x67   : > { %4789 = shalt.err (!%p4786_p3)
}
  0x68   : > { %4477 = dma.hbm_to_vmem [thread:$0]  (!%p5049_p6), %s6699_s2, 9216, %s235_s12, [#allocation6], %s4959_s23, %s4959_s23, %s4960_s28  }
  0x69   : > { %s4790_s17 = scalar_lea.hbm %s6701_s4, 16 }
  0x6a   : > { %p4791_p1 = scmp.ne.s32.totalorder %s6701_s4, %s4790_s17  ;;  %p4797_p0 = scmp.lt.u32.totalorder %s4790_s17, %s6701_s4 }
  0x6c   : > { %p4793_p3 = pnand %p4791_p1, %p5065_p8 }
  0x6e   : > { %p4794_p13 = pneg %p4793_p3 }
  0x70   : > { %p4799_p2 = pnand %p4797_p0, %p4794_p13 }
  0x72   : > { %4802 = shalt.err (!%p4799_p2)
}
  0x73   : > { %s4803_s29 = scalar_lea.vmem %s262_s15, 16  ;;  %s4810_s23 = scalar_lea.vmem %s262_s15, 32 }
  0x74   : > { %p4804_p5 = scmp.ne.s32.totalorder %s262_s15, %s4803_s29  ;;  %p4811_p4 = scmp.lt.s32.totalorder %s262_s15, %s262_s15 }
  0x75   : > { %p4812_p10 = scmp.lt.s32.totalorder %s4810_s23, %s4803_s29 }
  0x76   : > { %p4806_p7 = pnand %p4804_p5, %p5065_p8 }
  0x77   : > { %p4813_p11 = por %p4812_p10, %p4811_p4 }
  0x78   : > { %p4807_p9 = pneg %p4806_p7 }
  0x7a   : > { %p4814_p12 = pnand %p4813_p11, %p4807_p9 }
  0x7c   : > { %4817 = shalt.err (!%p4814_p12)
}
  0x7d   : > { %4483 = dma.hbm_to_vmem [thread:$0]  (!%p5049_p6), %s6701_s4, 16, %s262_s15, [#allocation9]  }
  0x7e   : > { %s4963_s13 = smov [#allocation13]   ;;  %s4818_s16 = scalar_lea.hbm %s6703_s6, 16 }
  0x7f   : > { %s283_s22 = sshll.u32 %s4963_s13, 4  ;;  %p4819_p1 = scmp.ne.s32.totalorder %s6703_s6, %s4818_s16  ;;  %s284_s22 = int_to_ptr.vmem [resolvable:$true] %s283_s22 }
  0x80   : > { %p4825_p0 = scmp.lt.u32.totalorder %s4818_s16, %s6703_s6 }
  0x81   : > { %p4821_p3 = pnand %p4819_p1, %p5065_p8 }
  0x83   : > { %p4822_p13 = pneg %p4821_p3 }
  0x85   : > { %p4827_p2 = pnand %p4825_p0, %p4822_p13 }
  0x87   : > { %4830 = shalt.err (!%p4827_p2)
}
  0x88   : > { %s4831_s15 = scalar_lea.vmem %s284_s22, 16  ;;  %s4838_s21 = scalar_lea.vmem %s284_s22, 32 }
  0x89   : > { %p4832_p5 = scmp.ne.s32.totalorder %s284_s22, %s4831_s15  ;;  %p4839_p4 = scmp.lt.s32.totalorder %s284_s22, %s284_s22 }
  0x8a   : > { %p4840_p10 = scmp.lt.s32.totalorder %s4838_s21, %s4831_s15 }
  0x8b   : > { %p4834_p7 = pnand %p4832_p5, %p5065_p8 }
  0x8c   : > { %p4841_p11 = por %p4840_p10, %p4839_p4 }
  0x8d   : > { %p4835_p9 = pneg %p4834_p7 }
  0x8f   : > { %p4842_p12 = pnand %p4841_p11, %p4835_p9 }
  0x91   : > { %4845 = shalt.err (!%p4842_p12)
}
  0x92   : > { %4489 = dma.hbm_to_vmem [thread:$0]  (!%p5049_p6), %s6703_s6, 16, %s284_s22, [#allocation12]  }
  0x93   : > { %s3082_s19 = sadd.s32 4294967294, %s4954_s27   ;;  %s5198_s11 = sadd.s32 1, %s4954_s27  }
  0x94   : > { %s30_s28 = ssub.s32 %s4954_s27, %s5198_s11  ;;  %s33_s12 = sadd.s32 1, %s4950_s26 }
  0x95   : > { %p31_p8 = scmp.eq.s32.totalorder %s30_s28, 0  ;;  %p40_p1 = scmp.ne.s32.totalorder %s4950_s26, %s4946_s25 }
  0x96   : > { %p41_p3 = scmp.eq.s32.totalorder %s4954_s27, 0  ;;  %p46_p13 = scmp.ne.s32.totalorder %s4946_s25, %s4942_s24 }
  0x97   : > { %s5209_s13 = scalar_select %p31_p8, %s4950_s26, %s33_s12  }
  0x98   : > { %p5211_p0 = por %p41_p3, %p40_p1  ;;  %p6720_p2 = scmp.eq.s32.totalorder %s5033_s30, 0 }
  0x99   : > { %p196_p5 = scmp.eq.s32.totalorder %s5033_s30, 1  ;;  %p202_p7 = scmp.eq.s32.totalorder %s3082_s19, 1 }
  0x9a   : > { %p5217_p6 = por %p6720_p2, %p46_p13  ;;  %p4504_p9 = scmp.lt.s32.totalorder %s4954_s27, 2 }
  0x9b   : > { %s294_s14 = sand.u32 1, %s4950_s26   ;;  %p5224_p4 = por %p196_p5, %p40_p1 }
  0x9c   : > { %p5228_p10 = por %p202_p7, %p46_p13  ;;  %s3091_s18 = sshll.u32 %s294_s14, 8 }
  0x9d   : > { %s6722_s16 = scalar_select %p5224_p4, 1, 0 }
  0x9e   : > { %s6723_s17 = scalar_select %p5228_p10, 1, 0 }
  0x9f   : > { %s3567_s20 = sshll.u32 %s4954_s27, 12  ;;  %s298_s29 = scalar_lea.vmem [#allocation2], %s3091_s18 }
  0xa0   : > { %s5236_s21 = scalar_lea.hbm %s6697_s0, %s3567_s20  ;;  %s305_s23 = sshll.u32 %s298_s29, 4  ;;  %s5238_s23 = int_to_ptr.vmem [resolvable:$true] %s305_s23 }
  0xa1   : > { %p5242_p11 = pnand %p4504_p9, %p5211_p0  ;;  %s5246_s28 = scalar_lea.sflag [#allocation3], %s294_s14 }
  0xa2   : > { %s4846_s12 = scalar_lea.hbm %s5236_s21, 4096  ;;  %s4851_s9 = scalar_lea.hbm %s6697_s0, 8192 }
  0xa3   : > { %p4847_p12 = scmp.ne.s32.totalorder %s5236_s21, %s4846_s12  ;;  %p4848_p8 = pneg %p5242_p11 }
  0xa4   : > { %p4852_p13 = scmp.lt.u32.totalorder %s5236_s21, %s6697_s0  ;;  %p4853_p0 = scmp.lt.u32.totalorder %s4851_s9, %s4846_s12 }
  0xa5   : > { %p4849_p1 = pnand %p4848_p8, %p4847_p12  ;;  %p4855_p5 = scmp.lt.u32.totalorder %s4846_s12, %s5236_s21 }
  0xa6   : > { %p4854_p2 = por %p4853_p0, %p4852_p13 }
  0xa7   : > { %p4850_p3 = pneg %p4849_p1 }
  0xa8   : > { %p4856_p7 = por %p4855_p5, %p4854_p2 }
  0xaa   : > { %p4857_p9 = pnand %p4856_p7, %p4850_p3 }
  0xac   : > { %4860 = shalt.err (!%p4857_p9)
}
  0xad   : > { %s4861_s14 = scalar_lea.vmem %s5238_s23, 4096  ;;  %s4964_s29 = smov [#allocation2]  }
  0xae   : > { %p4862_p12 = scmp.ne.s32.totalorder %s5238_s23, %s4861_s14  ;;  %s4866_s18 = sshll.u32 %s4964_s29, 4  ;;  %s4867_s18 = int_to_ptr.vmem [resolvable:$false] %s4866_s18 }
  0xaf   : > { %s4868_s20 = scalar_lea.vmem %s4867_s18, 8192  ;;  %p4869_p4 = scmp.lt.s32.totalorder %s5238_s23, %s4867_s18 }
  0xb0   : > { %p4864_p1 = pnand %p4862_p12, %p4848_p8  ;;  %p4870_p13 = scmp.lt.s32.totalorder %s4868_s20, %s4861_s14 }
  0xb2   : > { %p4865_p10 = pneg %p4864_p1  ;;  %p4871_p0 = por %p4870_p13, %p4869_p4 }
  0xb4   : > { %p4872_p2 = pnand %p4871_p0, %p4865_p10 }
  0xb6   : > { %4875 = shalt.err (!%p4872_p2)
}
  0xb7   : > { %s4965_s12 = smov 128   ;;  %s4966_s9 = smov 8  }
  0xb8   : > { %4493 = dma.hbm_to_vmem [thread:$0]  (!%p5242_p11), %s5236_s21, 4096, %s5238_s23, %s5246_s28, %s4965_s12, %s4965_s12, %s4966_s9  }
  0xb9   : > { %p6725_p8 = scmp.ne.s32.totalorder %s6716_s8, 0 }
  0xbb   : > { %317 = sbr.rel (%p6725_p8) target bundleno = 1240 (0x4d8), region = 48 }
  0xc2   : > { %s5277_s10 = sand.u32 1, %s4946_s25  }
  0xc3   : > { %s3095_s15 = sshll.u32 %s5277_s10, 8  ;;  %s320_s14 = scalar_lea.sflag [#allocation3], %s5277_s10 }
  0xc4   : > { %s5283_s29 = scalar_lea.vmem [#allocation2], %s3095_s15 }
  0xc5   : > { %4921 = dma.done.wait (%p5217_p6), %s320_s14, 4096  }
  0xc6   : > { %4923 = vsyncadd (%p5217_p6), %s320_s14, 4294963200  ;;  %p6726_p4 = scmp.eq.s32.totalorder %s5033_s30, 0 }
  0xc8   : > { %4925 = dma.done.wait (%p6726_p4), [#allocation6], 10240   ;;  %p6727_p10 = pmov %p6726_p4 }
  0xc9   : > { %p6728_p11 = pmov %p6726_p4 }
  0xca   : > { %4927 = vsyncadd (%p6727_p10), [#allocation6], 4294957056 }
  0xcb   : > { %4929 = dma.done.wait (%p6728_p11), [#allocation9], 1040   ;;  %p6729_p3 = pmov %p6726_p4 }
  0xcd   : > { %4931 = vsyncadd (%p6729_p3), [#allocation9], 4294966256  ;;  %p6730_p5 = pmov %p6729_p3 }
  0xce   : > { %p6731_p7 = pmov %p6729_p3 }
  0xcf   : > { %4933 = dma.done.wait (%p6730_p5), [#allocation12], 32  }
  0xd0   : > { %4935 = vsyncadd (%p6731_p7), [#allocation12], 4294967264  ;;  %v4558_v0 = vld [vmem:[#allocation5] sm:$0xff]   ;;  %v4559_v1 = vld [vmem:[#allocation5 + $0x8] sm:$0xff]   ;;  %vm4967_vm4 = vmmov 1   ;;  %s6556_s8 = scalar_lea.vmem [#allocation14], %s3095_s15 }
  0xd1   : > { %4027 = vmatprep.subr.bf16.mxu0 %v4558_v0  ;;  %4267 = vmatprep.subr.bf16.mxu1 %v4558_v0  ;;  %v4560_v2 = vld [vmem:[#allocation5 + $0x10] sm:$0xff]   ;;  %v4561_v3 = vld [vmem:[#allocation5 + $0x18] sm:$0xff]   ;;  %v379_v4 = vld [vmem:[%s5283_s29] sm:$0xff]  ;;  %s3568_s22 = sshll.u32 %s5033_s30, 12  ;;  %s2952_s21 = sshll.u32 %s6556_s8, 4  ;;  %s6650_s21 = int_to_ptr.vmem [resolvable:$true] %s2952_s21 }
  0xd2   : > { %4028 = vmatpush3.bf16.msra.mxu0 %v4558_v0  ;;  %4275 = vmatpush3.bf16.msra.mxu1 %v4558_v0  ;;  %v380_v5 = vld [vmem:[%s5283_s29 + $0x8] sm:$0xff]  ;;  %v4562_v7 = vld [vmem:[#allocation5 + $0x20] sm:$0xff]   ;;  %v4564_v12 = vld [vmem:[#allocation5 + $0x30] sm:$0xff]   ;;  %s6648_s28 = scalar_lea.hbm %s6704_s7, %s3568_s22  ;;  %s2939_s30 = scalar_lea.sflag [#allocation4], %s5277_s10 }
  0xd3   : > { %4029 = vmatprep.subr.bf16.mxu0 %v4559_v1  ;;  %4268 = vmatprep.subr.bf16.mxu1 %v4559_v1  ;;  %v411_v6 = vpack.c.bf16 %v380_v5, %v379_v4  ;;  %v395_v8 = vld [vmem:[%s5283_s29 + $0x80] sm:$0xff]  ;;  %v396_v9 = vld [vmem:[%s5283_s29 + $0x88] sm:$0xff]  ;;  %v4565_v13 = vld [vmem:[#allocation5 + $0x38] sm:$0xff]   ;;  %s4876_s18 = scalar_lea.vmem %s6650_s21, 4096  ;;  %p6792_p9 = scmp.ne.s32.totalorder %s6722_s16, 0 }
  0xd4   : > { %v419_v10 = vpack.c.bf16 %v396_v9, %v395_v8  ;;  %v4563_v11 = vld [vmem:[#allocation5 + $0x28] sm:$0xff]   ;;  %v381_v14 = vld [vmem:[%s5283_s29 + $0x10] sm:$0xff]  ;;  %v382_v15 = vld [vmem:[%s5283_s29 + $0x18] sm:$0xff]  ;;  %p4877_p6 = scmp.ne.s32.totalorder %s6650_s21, %s4876_s18  ;;  %s4969_s20 = smov [#allocation14]  }
  0xd5   : > { %4043 = vmatprep.mubr.bf16.mxu0 %v411_v6  ;;  %v383_v16 = vld [vmem:[%s5283_s29 + $0x20] sm:$0xff]  ;;  %v384_v17 = vld [vmem:[%s5283_s29 + $0x28] sm:$0xff]  ;;  %v397_v18 = vld [vmem:[%s5283_s29 + $0x90] sm:$0xff]  ;;  %v412_v24 = vpack.c.bf16 %v382_v15, %v381_v14  ;;  %s4880_s12 = sshll.u32 %s4969_s20, 4  ;;  %s4881_s12 = int_to_ptr.vmem [resolvable:$false] %s4880_s12 }
  0xd6   : > { %4030 = vmatpush3.bf16.msra.mxu0 %v4559_v1  ;;  %4276 = vmatpush3.bf16.msra.mxu1 %v4559_v1  ;;  %v398_v19 = vld [vmem:[%s5283_s29 + $0x98] sm:$0xff]  ;;  %v399_v20 = vld [vmem:[%s5283_s29 + $0xa0] sm:$0xff]  ;;  %v400_v21 = vld [vmem:[%s5283_s29 + $0xa8] sm:$0xff]  ;;  %v413_v25 = vpack.c.bf16 %v384_v17, %v383_v16  ;;  %p4878_p12 = pnand %p4877_p6, %p6792_p9  ;;  %s4882_s9 = scalar_lea.vmem %s4881_s12, 8192 }
  0xd7   : > { %4031 = vmatprep.subr.bf16.mxu0 %v4560_v2  ;;  %4269 = vmatprep.subr.bf16.mxu1 %v4560_v2  ;;  %v4567_v22 = vld [vmem:[#allocation7 + $0x140] sm:$0xff]   ;;  %v420_v26 = vpack.c.bf16 %v398_v19, %v397_v18  ;;  %v421_v28 = vpack.c.bf16 %v400_v21, %v399_v20  ;;  %v4569_v29 = vld [vmem:[#allocation7 + $0x108] sm:$0xff]   ;;  %v385_v30 = vld [vmem:[%s5283_s29 + $0x30] sm:$0xff]  ;;  %v691_v18 = vlaneseq  ;;  %p4883_p13 = scmp.lt.s32.totalorder %s6650_s21, %s4881_s12  ;;  %p4884_p0 = scmp.lt.s32.totalorder %s4882_s9, %s4876_s18 }
  0xd8   : > { %4059 = vmatprep.mubr.bf16.mxu1 %v419_v10  ;;  %v4566_v23 = vld [vmem:[#allocation7 + $0x100] sm:$0xff]   ;;  %v386_v31 = vld [vmem:[%s5283_s29 + $0x38] sm:$0xff]  ;;  %v4570_v32 = vld [vmem:[#allocation7 + $0x148] sm:$0xff]   ;;  %p4879_p1 = pneg %p4878_p12 }
  0xd9   : > { %v4568_v27 = vld [vmem:[#allocation7 + $0xc0] sm:$0xff]   ;;  %v388_v34 = vld [vmem:[%s5283_s29 + $0x48] sm:$0xff]  ;;  %v401_v35 = vld [vmem:[%s5283_s29 + $0xb0] sm:$0xff]  ;;  %v414_v42 = vpack.c.bf16 %v386_v31, %v385_v30  ;;  %v5333_v19 = vshrl.u32 %v691_v18, 7  ;;  %p4885_p2 = por %p4884_p0, %p4883_p13 }
  0xda   : > { %4032 = vmatpush3.bf16.msra.mxu0 %v4560_v2  ;;  %4277 = vmatpush3.bf16.msra.mxu1 %v4560_v2  ;;  %v387_v33 = vld [vmem:[%s5283_s29 + $0x40] sm:$0xff]  ;;  %v402_v36 = vld [vmem:[%s5283_s29 + $0xb8] sm:$0xff]  ;;  %v4571_v37 = vld [vmem:[#allocation7 + $0xc8] sm:$0xff]  }
  0xdb   : > { %4033 = vmatprep.subr.bf16.mxu0 %v4561_v3  ;;  %4270 = vmatprep.subr.bf16.mxu1 %v4561_v3  ;;  %v403_v38 = vld [vmem:[%s5283_s29 + $0xc0] sm:$0xff]  ;;  %v404_v39 = vld [vmem:[%s5283_s29 + $0xc8] sm:$0xff]  ;;  %v4572_v40 = vld [vmem:[#allocation7 + $0x110] sm:$0xff]   ;;  %v415_v44 = vpack.c.bf16 %v388_v34, %v387_v33  ;;  %v422_v45 = vpack.c.bf16 %v402_v36, %v401_v35  ;;  %v5338_v21 = vadd.s32 8, %v5333_v19  ;;  %vm829_vm0 = vcmp.lt.s32.totalorder %v5333_v19, 7  ;;  %p4886_p8 = pnand %p4885_p2, %p4879_p1 }
  0xdc   : > { %v4573_v41 = vld [vmem:[#allocation7 + $0x150] sm:$0xff]   ;;  %v4575_v46 = vld [vmem:[#allocation7 + $0x118] sm:$0xff]   ;;  %v423_v47 = vpack.c.bf16 %v404_v39, %v403_v38  ;;  %v391_v51 = vld [vmem:[%s5283_s29 + $0x60] sm:$0xff]  ;;  %vm728_vm1 = vcmp.lt.s32.totalorder %v5333_v19, 1  ;;  %vm3569_vm2 = vcmp.ne.s32.totalorder %v5333_v19, 0  ;;  %v4968_v19 = vmov 0.0|0.0  }
  0xdd   : > { %v4574_v43 = vld [vmem:[#allocation7 + $0xd0] sm:$0xff]   ;;  %v4576_v48 = vld [vmem:[#allocation7 + $0x158] sm:$0xff]   ;;  %v392_v52 = vld [vmem:[%s5283_s29 + $0x68] sm:$0xff]  ;;  %vm3570_vm3 = vcmp.ne.s32.totalorder %v5338_v21, 15 }
  0xde   : > { %4034 = vmatpush3.bf16.msra.mxu0 %v4561_v3  ;;  %4278 = vmatpush3.bf16.msra.mxu1 %v4561_v3  ;;  %v389_v49 = vld [vmem:[%s5283_s29 + $0x50] sm:$0xff]  ;;  %v390_v50 = vld [vmem:[%s5283_s29 + $0x58] sm:$0xff]  ;;  %v407_v56 = vld [vmem:[%s5283_s29 + $0xe0] sm:$0xff]  ;;  %v417_v62 = vpack.c.bf16 %v392_v52, %v391_v51 }
  0xdf   : > { %4035 = vmatprep.subr.bf16.mxu0 %v4562_v7  ;;  %4271 = vmatprep.subr.bf16.mxu1 %v4562_v7  ;;  %v405_v53 = vld [vmem:[%s5283_s29 + $0xd0] sm:$0xff]  ;;  %v406_v54 = vld [vmem:[%s5283_s29 + $0xd8] sm:$0xff]  ;;  %v408_v57 = vld [vmem:[%s5283_s29 + $0xe8] sm:$0xff]  ;;  %v416_v60 = vpack.c.bf16 %v390_v50, %v389_v49 }
  0xe0   : > { %v4577_v55 = vld [vmem:[#allocation7 + $0xd8] sm:$0xff]   ;;  %v4578_v58 = vld [vmem:[#allocation7 + $0x120] sm:$0xff]   ;;  %v424_v63 = vpack.c.bf16 %v406_v54, %v405_v53  ;;  %v425_v0 = vpack.c.bf16 %v408_v57, %v407_v56  ;;  %v393_v1 = vld [vmem:[%s5283_s29 + $0x70] sm:$0xff] }
  0xe1   : > { %v4579_v59 = vld [vmem:[#allocation7 + $0x160] sm:$0xff]   ;;  %v394_v2 = vld [vmem:[%s5283_s29 + $0x78] sm:$0xff]  ;;  %v409_v3 = vld [vmem:[%s5283_s29 + $0xf0] sm:$0xff] }
  0xe2   : > { %4036 = vmatpush3.bf16.msra.mxu0 %v4562_v7  ;;  %4279 = vmatpush3.bf16.msra.mxu1 %v4562_v7  ;;  %v4580_v61 = vld [vmem:[#allocation7 + $0xe0] sm:$0xff]   ;;  %v410_v4 = vld [vmem:[%s5283_s29 + $0xf8] sm:$0xff]  ;;  %v418_v5 = vpack.c.bf16 %v394_v2, %v393_v1  ;;  %v4581_v7 = vld [vmem:[#allocation7 + $0x128] sm:$0xff]  }
  0xe3   : > { %4037 = vmatprep.subr.bf16.mxu0 %v4563_v11  ;;  %4272 = vmatprep.subr.bf16.mxu1 %v4563_v11  ;;  %v426_v6 = vpack.c.bf16 %v410_v4, %v409_v3  ;;  %v4582_v8 = vld [vmem:[#allocation7 + $0x168] sm:$0xff]   ;;  %v4584_v10 = vld [vmem:[#allocation7 + $0x130] sm:$0xff]   ;;  %v4588_v14 = vld [vmem:[#allocation7 + $0x178] sm:$0xff]  }
  0xe4   : > { %v4583_v9 = vld [vmem:[#allocation7 + $0xe8] sm:$0xff]   ;;  %v4589_v15 = vld [vmem:[#allocation7 + $0xf8] sm:$0xff]   ;;  %v4590_v16 = vld [vmem:[#allocation7 + $0x40] sm:$0xff]  }
  0xe5   : > { %v4606_v17 = vld [vmem:[#allocation7 + $0x1c0] sm:$0xff]   ;;  %vm5385_vm5 = vmpackc.low %vm4967_vm4, %vm3569_vm2 }
  0xe6   : > { %4038 = vmatpush3.bf16.msra.mxu0 %v4563_v11  ;;  %4280 = vmatpush3.bf16.msra.mxu1 %v4563_v11  ;;  %v4585_v11 = vld [vmem:[#allocation7 + $0x170] sm:$0xff]   ;;  %v5335_v20 = vld [vmem:[#allocation10] ss:$0 sm:$0xff]  ;;  %vm5403_vm6 = vmpackc.low %vm3570_vm3, %vm4967_vm4 }
  0xe7   : > { %4039 = vmatprep.subr.bf16.mxu0 %v4564_v12  ;;  %4273 = vmatprep.subr.bf16.mxu1 %v4564_v12  ;;  %v4598_v56 = vld [vmem:[#allocation7 + $0x60] sm:$0xff]  }
  0xea   : > { %4040 = vmatpush3.bf16.msra.mxu0 %v4564_v12  ;;  %4281 = vmatpush3.bf16.msra.mxu1 %v4564_v12  ;;  %v4586_v12 = vld [vmem:[#allocation7 + $0xf0] sm:$0xff]  }
  0xeb   : > { %4041 = vmatprep.subr.bf16.mxu0 %v4565_v13  ;;  %4274 = vmatprep.subr.bf16.mxu1 %v4565_v13 }
  0xee   : > { %4042 = vmatpush3.bf16.msra.mxu0 %v4565_v13  ;;  %4282 = vmatpush3.bf16.msra.mxu1 %v4565_v13  ;;  %v4587_v13 = vld [vmem:[#allocation7 + $0x138] sm:$0xff]  }
  0xef   : > { %4075 = vmatprep.subr.bf16.mxu0 %v4567_v22  ;;  %3595 = vmatprep.subr.bf16.mxu1 %v4566_v23 }
  0xf1   : > { %4044 = vmatmul.mubr.bf16.vlgmr.msra.gmra.mrb[0].mxu0 %v412_v24  ;;  %4060 = vmatmul.mubr.bf16.vlgmr.msra.gmra.mrb[0].mxu1 %v420_v26 }
  0xf2   : > { %4047 = vmatprep.mubr.bf16.mxu0 %v413_v25  ;;  %4063 = vmatprep.mubr.bf16.mxu1 %v421_v28 }
  0xf3   : > { %3596 = vmatpush3.bf16.msra.mxu1 %v4568_v27  ;;  %4076 = vmatpush3.bf16.msra.mxu0 %v4567_v22 }
  0xf4   : > { %3597 = vmatprep.subr.bf16.mxu1 %v4569_v29  ;;  %4077 = vmatprep.subr.bf16.mxu0 %v4570_v32 }
  0xf7   : > { %3598 = vmatpush3.bf16.msra.mxu1 %v4571_v37  ;;  %4078 = vmatpush3.bf16.msra.mxu0 %v4570_v32 }
  0xf8   : > { %3599 = vmatprep.subr.bf16.mxu1 %v4572_v40  ;;  %4079 = vmatprep.subr.bf16.mxu0 %v4573_v41 }
  0xf9   : > { %4048 = vmatmul.mubr.bf16.gmra.mrb[4].mxu0 %v414_v42  ;;  %4064 = vmatmul.mubr.bf16.gmra.mrb[4].mxu1 %v422_v45 }
  0xfa   : > { %4051 = vmatprep.mubr.bf16.mxu0 %v415_v44  ;;  %4067 = vmatprep.mubr.bf16.mxu1 %v423_v47 }
  0xfb   : > { %3600 = vmatpush3.bf16.msra.mxu1 %v4574_v43  ;;  %4080 = vmatpush3.bf16.msra.mxu0 %v4573_v41 }
  0xfc   : > { %3601 = vmatprep.subr.bf16.mxu1 %v4575_v46  ;;  %4081 = vmatprep.subr.bf16.mxu0 %v4576_v48 }
  0xff   : > { %3602 = vmatpush3.bf16.msra.mxu1 %v4577_v55  ;;  %4082 = vmatpush3.bf16.msra.mxu0 %v4576_v48 }
 0x100   : > { %3603 = vmatprep.subr.bf16.mxu1 %v4578_v58  ;;  %4083 = vmatprep.subr.bf16.mxu0 %v4579_v59 }
 0x101   : > { %4052 = vmatmul.mubr.bf16.gmra.mrb[8].mxu0 %v416_v60  ;;  %4068 = vmatmul.mubr.bf16.gmra.mrb[8].mxu1 %v424_v63 }
 0x102   : > { %4055 = vmatprep.mubr.bf16.mxu0 %v417_v62  ;;  %4071 = vmatprep.mubr.bf16.mxu1 %v425_v0 }
 0x103   : > { %3604 = vmatpush3.bf16.msra.mxu1 %v4580_v61  ;;  %4084 = vmatpush3.bf16.msra.mxu0 %v4579_v59 }
 0x104   : > { %3605 = vmatprep.subr.bf16.mxu1 %v4581_v7  ;;  %4085 = vmatprep.subr.bf16.mxu0 %v4582_v8 }
 0x107   : > { %3606 = vmatpush3.bf16.msra.mxu1 %v4583_v9  ;;  %4086 = vmatpush3.bf16.msra.mxu0 %v4582_v8 }
 0x108   : > { %3607 = vmatprep.subr.bf16.mxu1 %v4584_v10  ;;  %4087 = vmatprep.subr.bf16.mxu0 %v4585_v11 }
 0x109   : > { %4056 = vmatmul.mubr.bf16.gmra.mrb[12].mxu0 %v418_v5  ;;  %4072 = vmatmul.mubr.bf16.gmra.mrb[12].mxu1 %v426_v6  ;;  %v4607_v6 = vld [vmem:[#allocation7 + $0x180] sm:$0xff]  }
 0x10b   : > { %3608 = vmatpush3.bf16.msra.mxu1 %v4586_v12  ;;  %4088 = vmatpush3.bf16.msra.mxu0 %v4585_v11 }
 0x10c   : > { %3609 = vmatprep.subr.bf16.mxu1 %v4587_v13  ;;  %4089 = vmatprep.subr.bf16.mxu0 %v4588_v14  ;;  %v4609_v13 = vld [vmem:[#allocation7 + $0x1c8] sm:$0xff]  }
 0x10f   : > { %3610 = vmatpush3.bf16.msra.mxu1 %v4589_v15  ;;  %4090 = vmatpush3.bf16.msra.mxu0 %v4588_v14 }
 0x110   : > { %3731 = vmatprep.subr.bf16.mxu0 %v4590_v16  ;;  %3867 = vmatprep.subr.bf16.mxu1 %v4606_v17 }
 0x1c4   : > { %v4045_v22 = vpop.f32.mrb[0].mxu0  ;;  %v4061_v25 = vpop.f32.mrb[0].mxu1 }
 0x1c5   : > { %v541_v23 = vadd.f32 %v4045_v22, %v5335_v20  ;;  %v532_v24 = vpop.f32.mrb[1].mxu0  ;;  %v605_v28 = vadd.f32 %v4061_v25, %v5335_v20  ;;  %v596_v29 = vpop.f32.mrb[1].mxu1 }
 0x1c6   : > { %v533_v26 = vadd.f32 %v5335_v20, %v532_v24  ;;  %v4046_v27 = vpop.f32.mrb[2].mxu0  ;;  %v597_v33 = vadd.f32 %v5335_v20, %v596_v29  ;;  %v4062_v34 = vpop.f32.mrb[2].mxu1 }
 0x1c7   : > { %v661_v30 = vmax.f32 %v541_v23, 0.0  ;;  %v544_v31 = vadd.f32 %v4046_v27, %v5335_v20  ;;  %v535_v32 = vpop.f32.mrb[3].mxu0  ;;  %v5350_v37 = vmax.f32 %v605_v28, 0.0  ;;  %v5353_v38 = vadd.f32 %v4062_v34, %v5335_v20  ;;  %v5355_v39 = vpop.f32.mrb[3].mxu1 }
 0x1c8   : > { %v659_v35 = vmax.f32 %v533_v26, 0.0  ;;  %v536_v36 = vadd.f32 %v5335_v20, %v535_v32  ;;  %v5357_v43 = vmax.f32 %v597_v33, 0.0  ;;  %v4591_v26 = vld [vmem:[#allocation7] sm:$0xff]  }
 0x1c9   : > { %v697_v40 = vrot.slane %v661_v30, 7  ;;  %v798_v41 = vrot.slane %v661_v30, 1  ;;  %v662_v42 = vmax.f32 %v544_v31, 0.0  ;;  %v4592_v31 = vld [vmem:[#allocation7 + $0x48] sm:$0xff]  }
 0x1ca   : > { %v696_v44 = vrot.slane %v659_v35, 7  ;;  %v797_v45 = vrot.slane %v659_v35, 1  ;;  %v660_v46 = vmax.f32 %v536_v36, 0.0  ;;  %v805_v34 = vrot.slane %v5357_v43, 1  ;;  %v4610_v36 = vld [vmem:[#allocation7 + $0x188] sm:$0xff]  }
 0x1cb   : > { %v713_v48 = vrot.slane %v662_v42, 7  ;;  %v814_v49 = vrot.slane %v662_v42, 1  ;;  %v5360_v50 = vpack.c.bf16 %v662_v42, %v661_v30 }
 0x1cc   : > { %v712_v52 = vrot.slane %v660_v46, 7  ;;  %v813_v53 = vrot.slane %v660_v46, 1  ;;  %v4049_v54 = vpop.f32.mrb[4].mxu0  ;;  %v5363_v55 = vpack.c.bf16 %v660_v46, %v659_v35  ;;  %v5373_v62 = vpop.f32.mrb[4].mxu1  ;;  %v4612_v46 = vld [vmem:[#allocation7 + $0x1d0] sm:$0xff]  }
 0x1cd   : > { %v831_v57 = vsel %vm829_vm0, %v798_v41, %v814_v49  ;;  %v847_v58 = vsel %vm829_vm0, %v814_v49, %v798_v41  ;;  %v557_v59 = vadd.f32 %v4049_v54, %v5335_v20  ;;  %v548_v60 = vpop.f32.mrb[5].mxu0  ;;  %v730_v61 = vsel %vm728_vm1, %v697_v40, %v713_v48  ;;  %v5389_v5 = vpop.f32.mrb[5].mxu1 }
 0x1ce   : > { %v5375_v63 = vpack.c.bf16 %v847_v58, %v831_v57  ;;  %v729_v0 = vsel %vm728_vm1, %v696_v44, %v712_v52  ;;  %v745_v1 = vsel %vm728_vm1, %v712_v52, %v696_v44  ;;  %v549_v2 = vadd.f32 %v5335_v20, %v548_v60  ;;  %v4050_v3 = vpop.f32.mrb[6].mxu0  ;;  %1220 = vmatprep.mubr.bf16.mxu1 %v5363_v55  ;;  %v5398_v12 = vpop.f32.mrb[6].mxu1 }
 0x1cf   : > { %v5391_v7 = vpack.c.bf16 %v729_v0, %v745_v1  ;;  %v5393_v8 = vmax.f32 %v557_v59, 0.0  ;;  %v560_v9 = vadd.f32 %v4050_v3, %v5335_v20  ;;  %v551_v10 = vpop.f32.mrb[7].mxu0  ;;  %v830_v11 = vsel %vm829_vm0, %v797_v45, %v813_v53  ;;  %v5411_v22 = vpop.f32.mrb[7].mxu1  ;;  %v4593_v0 = vld [vmem:[#allocation7 + $0x8] sm:$0xff]  }
 0x1d0   : > { %v663_v14 = vmax.f32 %v549_v2, 0.0  ;;  %v552_v15 = vadd.f32 %v5335_v20, %v551_v10  ;;  %v846_v17 = vsel %vm829_vm0, %v813_v53, %v797_v45  ;;  %v746_v18 = vsel %vm728_vm1, %v713_v48, %v697_v40  ;;  %v4594_v10 = vld [vmem:[#allocation7 + $0x50] sm:$0xff]  }
 0x1d1   : > { %v699_v23 = vrot.slane %v5393_v8, 7  ;;  %v800_v24 = vrot.slane %v5393_v8, 1  ;;  %v5415_v25 = vmax.f32 %v560_v9, 0.0  ;;  %3139 = vmatmul.mubr.msk.bf16.vlgmr.msra.gmra.mrb[16].mxu1 %vm5385_vm5, %v5391_v7  ;;  %v5420_v21 = vpack.c.bf16 %v846_v17, %v830_v11 }
 0x1d2   : > { %v698_v27 = vrot.slane %v663_v14, 7  ;;  %v799_v28 = vrot.slane %v663_v14, 1  ;;  %v664_v29 = vmax.f32 %v552_v15, 0.0  ;;  %1228 = vmatprep.mubr.bf16.mxu1 %v5360_v50  ;;  %v5423_v30 = vpack.c.bf16 %v730_v61, %v746_v18  ;;  %3868 = vmatpush3.bf16.msra.mxu1 %v4607_v6 }
 0x1d3   : > { %v715_v32 = vrot.slane %v5415_v25, 7  ;;  %v816_v33 = vrot.slane %v5415_v25, 1  ;;  %4091 = vmatprep.mubr.msk.bf16.mxu0 %vm5403_vm6, %v5420_v21  ;;  %v5433_v35 = vpack.c.bf16 %v5415_v25, %v5393_v8  ;;  %3869 = vmatprep.subr.bf16.mxu1 %v4609_v13  ;;  %v5441_v45 = vmax.f32 %v5353_v38, 0.0  ;;  %v4613_v13 = vld [vmem:[#allocation7 + $0x190] sm:$0xff]  }
 0x1d4   : > { %v714_v40 = vrot.slane %v664_v29, 7  ;;  %v815_v41 = vrot.slane %v664_v29, 1  ;;  %4092 = vmatmul.mubr.msk.bf16.vlgmr.msra.gmra.mrb[16].mxu0 %vm5403_vm6, %v5375_v63  ;;  %v4053_v42 = vpop.f32.mrb[8].mxu0  ;;  %v5438_v44 = vpack.c.bf16 %v664_v29, %v663_v14  ;;  %v600_v54 = vadd.f32 %v5335_v20, %v5355_v39  ;;  %v5450_v57 = vpop.f32.mrb[8].mxu1 }
 0x1d5   : > { %3732 = vmatpush3.bf16.msra.mxu0 %v4591_v26  ;;  %v573_v48 = vadd.f32 %v4053_v42, %v5335_v20  ;;  %v564_v49 = vpop.f32.mrb[9].mxu0  ;;  %v833_v52 = vsel %vm829_vm0, %v800_v24, %v816_v33  ;;  %v849_v53 = vsel %vm829_vm0, %v816_v33, %v800_v24  ;;  %v5459_v1 = vpop.f32.mrb[9].mxu1  ;;  %v4615_v26 = vld [vmem:[#allocation7 + $0x1d8] sm:$0xff]   ;;  %v616_v42 = vadd.f32 %v5335_v20, %v5411_v22 }
 0x1d6   : > { %v565_v58 = vadd.f32 %v5335_v20, %v564_v49  ;;  %v4054_v38 = vpop.f32.mrb[10].mxu0  ;;  %v832_v59 = vsel %vm829_vm0, %v799_v28, %v815_v41  ;;  %v848_v60 = vsel %vm829_vm0, %v815_v41, %v799_v28  ;;  %3733 = vmatprep.subr.bf16.mxu0 %v4592_v31  ;;  %v5457_v61 = vpack.c.bf16 %v849_v53, %v833_v52  ;;  %v5468_v11 = vpop.f32.mrb[10].mxu1  ;;  %v4595_v41 = vld [vmem:[#allocation7 + $0x10] sm:$0xff]   ;;  %v4596_v53 = vld [vmem:[#allocation7 + $0x58] sm:$0xff]  }
 0x1d7   : > { %v5461_v2 = vmax.f32 %v573_v48, 0.0  ;;  %v576_v39 = vadd.f32 %v4054_v38, %v5335_v20  ;;  %v567_v3 = vpop.f32.mrb[11].mxu0  ;;  %v5464_v6 = vpack.c.bf16 %v848_v60, %v832_v59  ;;  %v731_v9 = vsel %vm728_vm1, %v698_v27, %v714_v40  ;;  %3870 = vmatpush3.bf16.msra.mxu1 %v4610_v36  ;;  %v5476_v24 = vpop.f32.mrb[11].mxu1 }
 0x1d8   : > { %v5470_v14 = vmax.f32 %v565_v58, 0.0  ;;  %v568_v15 = vadd.f32 %v5335_v20, %v567_v3  ;;  %v747_v17 = vsel %vm728_vm1, %v714_v40, %v698_v27  ;;  %3871 = vmatprep.subr.bf16.mxu1 %v4612_v46  ;;  %v5498_v49 = vmax.f32 %v600_v54, 0.0  ;;  %v4616_v58 = vld [vmem:[#allocation7 + $0x198] sm:$0xff]  }
 0x1d9   : > { %v802_v29 = vrot.slane %v5461_v2, 1  ;;  %v5480_v31 = vmax.f32 %v576_v39, 0.0  ;;  %3143 = vmatmul.mubr.msk.bf16.gmra.mrb[20].mxu1 %vm5385_vm5, %v5423_v30  ;;  %4095 = vmatprep.mubr.msk.bf16.mxu0 %vm5403_vm6, %v5464_v6  ;;  %v5488_v27 = vpack.c.bf16 %v731_v9, %v747_v17  ;;  %v621_v52 = vadd.f32 %v5373_v62, %v5335_v20 }
 0x1da   : > { %v700_v33 = vrot.slane %v5470_v14, 7  ;;  %v801_v36 = vrot.slane %v5470_v14, 1  ;;  %v5492_v40 = vmax.f32 %v568_v15, 0.0  ;;  %1236 = vmatprep.mubr.bf16.mxu1 %v5438_v44  ;;  %3734 = vmatpush3.bf16.msra.mxu0 %v4593_v0  ;;  %v732_v54 = vsel %vm728_vm1, %v699_v23, %v715_v32  ;;  %v4618_v0 = vld [vmem:[#allocation7 + $0x1e0] sm:$0xff]  }
 0x1db   : > { %v818_v48 = vrot.slane %v5480_v31, 1  ;;  %3735 = vmatprep.subr.bf16.mxu0 %v4594_v10  ;;  %3872 = vmatpush3.bf16.msra.mxu1 %v4613_v13  ;;  %v748_v62 = vsel %vm728_vm1, %v715_v32, %v699_v23  ;;  %v637_v22 = vadd.f32 %v5450_v57, %v5335_v20 }
 0x1dc   : > { %v716_v38 = vrot.slane %v5492_v40, 7  ;;  %v817_v59 = vrot.slane %v5492_v40, 1  ;;  %4096 = vmatmul.mubr.msk.bf16.gmra.mrb[20].mxu0 %vm5403_vm6, %v5457_v61  ;;  %v4057_v60 = vpop.f32.mrb[12].mxu0  ;;  %3873 = vmatprep.subr.bf16.mxu1 %v4615_v26  ;;  %v5525_v15 = vpop.f32.mrb[12].mxu1  ;;  %v4597_v26 = vld [vmem:[#allocation7 + $0x18] sm:$0xff]  }
 0x1dd   : > { %v589_v39 = vadd.f32 %v4057_v60, %v5335_v20  ;;  %v580_v3 = vpop.f32.mrb[13].mxu0  ;;  %v835_v9 = vsel %vm829_vm0, %v802_v29, %v818_v48  ;;  %v851_v10 = vsel %vm829_vm0, %v818_v48, %v802_v29  ;;  %v5534_v60 = vpop.f32.mrb[13].mxu1 }
 0x1de   : > { %v581_v8 = vadd.f32 %v5335_v20, %v580_v3  ;;  %v4058_v25 = vpop.f32.mrb[14].mxu0  ;;  %v834_v23 = vsel %vm829_vm0, %v801_v36, %v817_v59  ;;  %v850_v32 = vsel %vm829_vm0, %v817_v59, %v801_v36  ;;  %v5532_v17 = vpack.c.bf16 %v851_v10, %v835_v9  ;;  %3736 = vmatpush3.bf16.msra.mxu0 %v4595_v41  ;;  %v5542_v13 = vpop.f32.mrb[14].mxu1  ;;  %v4619_v36 = vld [vmem:[#allocation7 + $0x1a0] sm:$0xff]  }
 0x1df   : > { %v5536_v29 = vmax.f32 %v589_v39, 0.0  ;;  %v592_v48 = vadd.f32 %v4058_v25, %v5335_v20  ;;  %v583_v47 = vpop.f32.mrb[15].mxu0  ;;  %v5539_v18 = vpack.c.bf16 %v850_v32, %v834_v23  ;;  %v821_v3 = vrot.slane %v5498_v49, 1  ;;  %3737 = vmatprep.subr.bf16.mxu0 %v4596_v53  ;;  %3874 = vmatpush3.bf16.msra.mxu1 %v4616_v58  ;;  %v5551_v10 = vpop.f32.mrb[15].mxu1  ;;  %v4620_v25 = vld [vmem:[#allocation7 + $0x1e8] sm:$0xff]  }
 0x1e0   : > { %v5544_v59 = vmax.f32 %v581_v8, 0.0  ;;  %v584_v41 = vadd.f32 %v5335_v20, %v583_v47  ;;  %v5547_v9 = vmax.f32 %v621_v52, 0.0  ;;  %v5549_v39 = vpack.c.bf16 %v732_v54, %v748_v62  ;;  %3875 = vmatprep.subr.bf16.mxu1 %v4618_v0  ;;  %v4599_v0 = vld [vmem:[#allocation7 + $0x20] sm:$0xff]  }
 0x1e1   : > { %v804_v53 = vrot.slane %v5536_v29, 1  ;;  %v5555_v32 = vmax.f32 %v592_v48, 0.0  ;;  %3147 = vmatmul.mubr.msk.bf16.gmra.mrb[24].mxu1 %vm5385_vm5, %v5488_v27  ;;  %4099 = vmatprep.mubr.msk.bf16.mxu0 %vm5403_vm6, %v5539_v18  ;;  %v613_v47 = vadd.f32 %v5335_v20, %v5389_v5  ;;  %v4600_v5 = vld [vmem:[#allocation7 + $0x68] sm:$0xff]   ;;  %v624_v62 = vadd.f32 %v5398_v12, %v5335_v20 }
 0x1e2   : > { %v803_v58 = vrot.slane %v5544_v59, 1  ;;  %v5567_v54 = vmax.f32 %v584_v41, 0.0  ;;  %1244 = vmatprep.mubr.bf16.mxu1 %v5433_v35  ;;  %3738 = vmatpush3.bf16.msra.mxu0 %v4597_v26  ;;  %v5583_v26 = vpack.c.bf16 %v5492_v40, %v5470_v14  ;;  %v749_v57 = vsel %vm728_vm1, %v716_v38, %v700_v33 }
 0x1e3   : > { %v820_v48 = vrot.slane %v5555_v32, 1  ;;  %v5574_v28 = vmax.f32 %v613_v47, 0.0  ;;  %3739 = vmatprep.subr.bf16.mxu0 %v4598_v56  ;;  %3876 = vmatpush3.bf16.msra.mxu1 %v4619_v36  ;;  %v4621_v47 = vld [vmem:[#allocation7 + $0x1a8] sm:$0xff]   ;;  %v5599_v12 = vmax.f32 %v624_v62, 0.0  ;;  %v4622_v62 = vld [vmem:[#allocation7 + $0x1f0] sm:$0xff]   ;;  %v6738_v14 = vrot.slane %v5441_v45, 1 }
 0x1e4   : > { %v819_v52 = vrot.slane %v5567_v54, 1  ;;  %4100 = vmatmul.mubr.msk.bf16.gmra.mrb[24].mxu0 %vm5403_vm6, %v5532_v17  ;;  %3877 = vmatprep.subr.bf16.mxu1 %v4620_v25  ;;  %v4601_v25 = vld [vmem:[#allocation7 + $0x28] sm:$0xff]   ;;  %v6739_v40 = vrot.slane %v5350_v37, 1 }
 0x1e5   : > { %v807_v36 = vrot.slane %v5574_v28, 1  ;;  %v837_v8 = vsel %vm829_vm0, %v804_v53, %v820_v48  ;;  %v853_v41 = vsel %vm829_vm0, %v820_v48, %v804_v53  ;;  %v838_v53 = vsel %vm829_vm0, %v805_v34, %v821_v3 }
 0x1e6   : > { %v836_v23 = vsel %vm829_vm0, %v803_v58, %v819_v52  ;;  %v852_v46 = vsel %vm829_vm0, %v819_v52, %v803_v58  ;;  %v5597_v51 = vpack.c.bf16 %v853_v41, %v837_v8  ;;  %3740 = vmatpush3.bf16.msra.mxu0 %v4599_v0  ;;  %v854_v52 = vsel %vm829_vm0, %v821_v3, %v805_v34  ;;  %v4602_v58 = vld [vmem:[#allocation7 + $0x70] sm:$0xff]   ;;  %v4604_v0 = vld [vmem:[#allocation7 + $0x78] sm:$0xff]  }
 0x1e7   : > { %v5601_v56 = vpack.c.bf16 %v852_v46, %v836_v23  ;;  %3741 = vmatprep.subr.bf16.mxu0 %v4600_v5  ;;  %v5615_v23 = vpack.c.bf16 %v854_v52, %v838_v53  ;;  %3878 = vmatpush3.bf16.msra.mxu1 %v4621_v47  ;;  %v4623_v8 = vld [vmem:[#allocation7 + $0x1b0] sm:$0xff]   ;;  %v5625_v34 = vmax.f32 %v616_v42, 0.0  ;;  %v733_v3 = vsel %vm728_vm1, %v700_v33, %v716_v38  ;;  %v4624_v5 = vld [vmem:[#allocation7 + $0x1f8] sm:$0xff]  }
 0x1e8   : > { %6736 = vst [vmem:[#allocation20_spill] sm:$0xff] %v5597_v51  ;;  %v629_v48 = vadd.f32 %v5335_v20, %v5459_v1  ;;  %v5642_v42 = vmax.f32 %v637_v22, 0.0  ;;  %v5644_v41 = vpack.c.bf16 %v733_v3, %v749_v57  ;;  %v5648_v47 = vpack.c.bf16 %v5480_v31, %v5461_v2  ;;  %v4603_v1 = vld [vmem:[#allocation7 + $0x30] sm:$0xff]   ;;  %3879 = vmatprep.subr.bf16.mxu1 %v4622_v62  ;;  %v4625_v38 = vld [vmem:[#allocation7 + $0x1b8] sm:$0xff]  }
 0x1e9   : > { %6737 = vst [vmem:[#allocation21_spill] sm:$0xff] %v5615_v23  ;;  %3151 = vmatmul.mubr.msk.bf16.gmra.mrb[28].mxu1 %vm5385_vm5, %v5549_v39  ;;  %4103 = vmatprep.mubr.msk.bf16.mxu0 %vm5403_vm6, %v5601_v56  ;;  %v839_v33 = vsel %vm829_vm0, %v6739_v40, %v6738_v14  ;;  %v823_v53 = vrot.slane %v5625_v34, 1  ;;  %v6740_v22 = vmov %v6739_v40  ;;  %v6741_v3 = vmov %v6738_v14 }
 0x1ea   : > { %1252 = vmatprep.mubr.bf16.mxu1 %v5583_v26  ;;  %3742 = vmatpush3.bf16.msra.mxu0 %v4601_v25  ;;  %v5658_v52 = vmax.f32 %v629_v48, 0.0  ;;  %v855_v57 = vsel %vm829_vm0, %v6741_v3, %v6740_v22  ;;  %v810_v14 = vrot.slane %v5642_v42, 1  ;;  %v640_v40 = vadd.f32 %v5468_v11, %v5335_v20 }
 0x1eb   : > { %3743 = vmatprep.subr.bf16.mxu0 %v4602_v58  ;;  %v5671_v48 = vpack.c.bf16 %v855_v57, %v839_v33  ;;  %3880 = vmatpush3.bf16.msra.mxu1 %v4623_v8  ;;  %v632_v22 = vadd.f32 %v5335_v20, %v5476_v24  ;;  %v840_v33 = vsel %vm829_vm0, %v807_v36, %v823_v53  ;;  %v6743_v57 = vrot.slane %v5480_v31, 7  ;;  %v4605_v24 = vld [vmem:[#allocation7 + $0x38] sm:$0xff]  }
 0x1ec   : > { %4104 = vmatmul.mubr.msk.bf16.gmra.mrb[28].mxu0 %vm5403_vm6, %v5597_v51  ;;  %v809_v62 = vrot.slane %v5658_v52, 1  ;;  %3881 = vmatprep.subr.bf16.mxu1 %v4624_v5  ;;  %v5684_v3 = vmax.f32 %v640_v40, 0.0  ;;  %v856_v11 = vsel %vm829_vm0, %v823_v53, %v807_v36  ;;  %v653_v8 = vadd.f32 %v5525_v15, %v5335_v20 }
 0x1ed   : > { %6742 = vst [vmem:[#allocation22_spill] sm:$0xff] %v5671_v48  ;;  %4107 = vmatprep.mubr.msk.bf16.mxu0 %vm5403_vm6, %v5615_v23  ;;  %v6744_v25 = vrot.slane %v5461_v2, 7  ;;  %v5696_v46 = vmax.f32 %v632_v22, 0.0  ;;  %v5698_v5 = vpack.c.bf16 %v856_v11, %v840_v33  ;;  %v6747_v36 = vmov %v6743_v57  ;;  %v5708_v23 = vld [vmem:[#allocation7 + $0x80] sm:$0xff]  }
 0x1ee   : > { %3744 = vmatpush3.bf16.msra.mxu0 %v4603_v1  ;;  %v645_v53 = vadd.f32 %v5335_v20, %v5534_v60  ;;  %v5712_v22 = vmax.f32 %v653_v8, 0.0  ;;  %v6748_v11 = vrot.slane %v5599_v12, 1  ;;  %v6749_v8 = vrot.slane %v5547_v9, 1 }
 0x1ef   : > { %v734_v58 = vsel %vm728_vm1, %v6744_v25, %v6743_v57  ;;  %6745 = vst [vmem:[#allocation23_spill] sm:$0xff] %v5698_v5  ;;  %v6746_v40 = vmov %v6744_v25  ;;  %3745 = vmatprep.subr.bf16.mxu0 %v4604_v0  ;;  %v826_v25 = vrot.slane %v5684_v3, 1  ;;  %3882 = vmatpush3.bf16.msra.mxu1 %v4625_v38  ;;  %v825_v31 = vrot.slane %v5696_v46, 1 }
 0x1f0   : > { %v750_v15 = vsel %vm728_vm1, %v6747_v36, %v6746_v40  ;;  %v5721_v60 = vmax.f32 %v645_v53, 0.0  ;;  %v5725_v0 = vpack.c.bf16 %v5567_v54, %v5544_v59  ;;  %v812_v38 = vrot.slane %v5712_v22, 1 }
 0x1f1   : > { %v5714_v33 = vpack.c.bf16 %v734_v58, %v750_v15  ;;  %3155 = vmatmul.mubr.msk.bf16.gmra.mrb[32].mxu1 %vm5385_vm5, %v5644_v41  ;;  %v841_v57 = vsel %vm829_vm0, %v6749_v8, %v6748_v11  ;;  %v6750_v40 = vmov %v6749_v8  ;;  %v6751_v36 = vmov %v6748_v11 }
 0x1f2   : > { %1260 = vmatprep.mubr.bf16.mxu1 %v5648_v47  ;;  %v857_v15 = vsel %vm829_vm0, %v6751_v36, %v6750_v40  ;;  %3746 = vmatpush3.bf16.msra.mxu0 %v4605_v24  ;;  %v811_v58 = vrot.slane %v5721_v60, 1  ;;  %v656_v2 = vadd.f32 %v5542_v13, %v5335_v20  ;;  %v648_v11 = vadd.f32 %v5335_v20, %v5551_v10 }
 0x1f3   : > { %v5744_v1 = vpack.c.bf16 %v857_v15, %v841_v57  ;;  %4123 = vmatprep.subr.bf16.mxu0 %v5708_v23  ;;  %v842_v24 = vsel %vm829_vm0, %v809_v62, %v825_v31  ;;  %v858_v8 = vsel %vm829_vm0, %v825_v31, %v809_v62  ;;  %v6752_v57 = vrot.slane %v5567_v54, 7 }
 0x1f4   : > { %4108 = vmatmul.mubr.msk.bf16.gmra.mrb[32].mxu0 %vm5403_vm6, %v5671_v48  ;;  %v6753_v40 = vrot.slane %v5544_v59, 7  ;;  %v690_v36 = vmax.f32 %v656_v2, 0.0  ;;  %v5767_v15 = vpack.c.bf16 %v858_v8, %v842_v24  ;;  %v5777_v31 = vpack.c.bf16 %v5555_v32, %v5536_v29 }
 0x1f5   : > { %4111 = vmatprep.mubr.msk.bf16.mxu0 %vm5403_vm6, %v5698_v5  ;;  %v6755_v10 = vmov %v6752_v57  ;;  %v688_v53 = vmax.f32 %v648_v11, 0.0  ;;  %v859_v2 = vsel %vm829_vm0, %v826_v25, %v810_v14  ;;  %v6756_v54 = vrot.slane %v5555_v32, 7 }
 0x1f6   : > { %v735_v13 = vsel %vm728_vm1, %v6753_v40, %v6752_v57  ;;  %v6754_v20 = vmov %v6753_v40  ;;  %v843_v40 = vsel %vm829_vm0, %v810_v14, %v826_v25  ;;  %v727_v24 = vrot.slane %v690_v36, 7 }
 0x1f7   : > { %v751_v62 = vsel %vm728_vm1, %v6755_v10, %v6754_v20  ;;  %v828_v59 = vrot.slane %v690_v36, 1  ;;  %v5785_v8 = vpack.c.bf16 %v859_v2, %v843_v40  ;;  %v6757_v20 = vrot.slane %v5536_v29, 7 }
 0x1f8   : > { %v5779_v57 = vpack.c.bf16 %v735_v13, %v751_v62  ;;  %v726_v11 = vrot.slane %v688_v53, 7  ;;  %v827_v13 = vrot.slane %v688_v53, 1  ;;  %v6759_v5 = vmov %v6756_v54 }
 0x1f9   : > { %v736_v10 = vsel %vm728_vm1, %v6757_v20, %v6756_v54  ;;  %v6758_v62 = vmov %v6757_v20  ;;  %v5801_v25 = vpack.c.bf16 %v5498_v49, %v5357_v43  ;;  %3159 = vmatmul.mubr.msk.bf16.gmra.mrb[36].mxu1 %vm5385_vm5, %v5714_v33  ;;  %v845_v2 = vsel %vm829_vm0, %v812_v38, %v828_v59 }
 0x1fa   : > { %v752_v14 = vsel %vm728_vm1, %v6759_v5, %v6758_v62  ;;  %v861_v29 = vsel %vm829_vm0, %v828_v59, %v812_v38  ;;  %v6760_v32 = vrot.slane %v5498_v49, 7  ;;  %v6761_v5 = vrot.slane %v5357_v43, 7  ;;  %1268 = vmatprep.mubr.bf16.mxu1 %v5725_v0 }
 0x1fb   : > { %v5806_v40 = vpack.c.bf16 %v736_v10, %v752_v14  ;;  %v844_v20 = vsel %vm829_vm0, %v811_v58, %v827_v13  ;;  %v860_v10 = vsel %vm829_vm0, %v827_v13, %v811_v58  ;;  %v5823_v62 = vpack.c.bf16 %v861_v29, %v845_v2 }
 0x1fc   : > { %v737_v54 = vsel %vm728_vm1, %v6761_v5, %v6760_v32  ;;  %v6762_v14 = vmov %v6761_v5  ;;  %v6763_v38 = vmov %v6760_v32  ;;  %v5831_v48 = vpack.c.bf16 %v860_v10, %v844_v20  ;;  %4112 = vmatmul.mubr.msk.bf16.gmra.mrb[36].mxu0 %vm5403_vm6, %v5744_v1 }
 0x1fd   : > { %v753_v59 = vsel %vm728_vm1, %v6763_v38, %v6762_v14  ;;  %v5837_v5 = vpack.c.bf16 %v5441_v45, %v5350_v37  ;;  %v6764_v51 = vrot.slane %v5441_v45, 7  ;;  %v6765_v58 = vrot.slane %v5350_v37, 7  ;;  %4115 = vmatprep.mubr.msk.bf16.mxu0 %vm5403_vm6, %v5767_v15 }
 0x1fe   : > { %v5833_v32 = vpack.c.bf16 %v737_v54, %v753_v59  ;;  %v5856_v29 = vpack.c.bf16 %v5625_v34, %v5574_v28  ;;  %v6768_v54 = vrot.slane %v5625_v34, 7  ;;  %v6769_v20 = vrot.slane %v5574_v28, 7 }
 0x1ff   : > { %v738_v43 = vsel %vm728_vm1, %v6765_v58, %v6764_v51  ;;  %v6766_v49 = vmov %v6765_v58  ;;  %v6767_v13 = vmov %v6764_v51  ;;  %v5879_v59 = vpack.c.bf16 %v5599_v12, %v5547_v9 }
 0x200   : > { %v754_v2 = vsel %vm728_vm1, %v6767_v13, %v6766_v49  ;;  %v739_v51 = vsel %vm728_vm1, %v6769_v20, %v6768_v54  ;;  %v6770_v10 = vmov %v6769_v20  ;;  %v6771_v37 = vmov %v6768_v54 }
 0x201   : > { %v755_v45 = vsel %vm728_vm1, %v6771_v37, %v6770_v10  ;;  %v5873_v14 = vpack.c.bf16 %v738_v43, %v754_v2  ;;  %v6772_v58 = vrot.slane %v5599_v12, 7  ;;  %v6773_v28 = vrot.slane %v5547_v9, 7  ;;  %3163 = vmatmul.mubr.msk.bf16.gmra.mrb[40].mxu1 %vm5385_vm5, %v5779_v57 }
 0x202   : > { %v5875_v38 = vpack.c.bf16 %v739_v51, %v755_v45  ;;  %v5895_v2 = vpack.c.bf16 %v5696_v46, %v5658_v52  ;;  %v6776_v54 = vrot.slane %v5696_v46, 7  ;;  %v6777_v20 = vrot.slane %v5658_v52, 7  ;;  %1276 = vmatprep.mubr.bf16.mxu1 %v5777_v31 }
 0x203   : > { %v740_v34 = vsel %vm728_vm1, %v6773_v28, %v6772_v58  ;;  %v6774_v49 = vmov %v6773_v28  ;;  %v6775_v13 = vmov %v6772_v58  ;;  %v5915_v58 = vpack.c.bf16 %v5684_v3, %v5642_v42 }
 0x204   : > { %v756_v43 = vsel %vm728_vm1, %v6775_v13, %v6774_v49  ;;  %v741_v51 = vsel %vm728_vm1, %v6777_v20, %v6776_v54  ;;  %v6778_v10 = vmov %v6777_v20  ;;  %v6779_v9 = vmov %v6776_v54  ;;  %4116 = vmatmul.mubr.msk.bf16.gmra.mrb[40].mxu0 %vm5403_vm6, %v5785_v8 }
 0x205   : > { %v757_v12 = vsel %vm728_vm1, %v6779_v9, %v6778_v10  ;;  %v5909_v37 = vpack.c.bf16 %v740_v34, %v756_v43  ;;  %v6780_v28 = vrot.slane %v5684_v3, 7  ;;  %v6781_v49 = vrot.slane %v5642_v42, 7  ;;  %4119 = vmatprep.mubr.msk.bf16.mxu0 %vm5403_vm6, %v5831_v48 }
 0x206   : > { %v5911_v45 = vpack.c.bf16 %v741_v51, %v757_v12  ;;  %v5930_v43 = vpack.c.bf16 %v688_v53, %v5721_v60  ;;  %v6784_v54 = vrot.slane %v5721_v60, 7  ;;  %v5948_v53 = vpack.c.bf16 %v690_v36, %v5712_v22  ;;  %v4614_v36 = vld [vmem:[#allocation7 + $0x90] sm:$0xff]  }
 0x207   : > { %v742_v52 = vsel %vm728_vm1, %v6781_v49, %v6780_v28  ;;  %v6782_v46 = vmov %v6781_v49  ;;  %v6783_v13 = vmov %v6780_v28  ;;  %v6786_v9 = vrot.slane %v5712_v22, 7  ;;  %v4611_v22 = vld [vmem:[#allocation7 + $0x88] sm:$0xff]   ;;  %v4629_v49 = vld [vmem:[#allocation7 + $0xb8] sm:$0xff]  }
 0x208   : > { %v758_v34 = vsel %vm728_vm1, %v6783_v13, %v6782_v46  ;;  %v743_v20 = vsel %vm728_vm1, %v6784_v54, %v726_v11  ;;  %v6785_v51 = vmov %v6784_v54 }
 0x209   : > { %v759_v10 = vsel %vm728_vm1, %v726_v11, %v6785_v51  ;;  %v5943_v42 = vpack.c.bf16 %v742_v52, %v758_v34  ;;  %v744_v12 = vsel %vm728_vm1, %v6786_v9, %v727_v24  ;;  %v6787_v60 = vmov %v6786_v9  ;;  %3167 = vmatmul.mubr.msk.bf16.gmra.mrb[44].mxu1 %vm5385_vm5, %v5806_v40  ;;  %v4630_v52 = vld [vmem:[#allocation7 + $0x200] sm:$0xff]  }
 0x20a   : > { %v5945_v3 = vpack.c.bf16 %v743_v20, %v759_v10  ;;  %v760_v11 = vsel %vm728_vm1, %v727_v24, %v6787_v60  ;;  %1284 = vmatprep.mubr.bf16.mxu1 %v5801_v25  ;;  %v4617_v24 = vld [vmem:[#allocation7 + $0x98] sm:$0xff]  }
 0x20b   : > { %v5959_v28 = vpack.c.bf16 %v744_v12, %v760_v11  ;;  %v4639_v12 = vld [vmem:[#allocation8 + $0x8] sm:$0xff]  }
 0x20c   : > { %4120 = vmatmul.mubr.msk.bf16.gmra.mrb[44].mxu0 %vm5403_vm6, %v5823_v62 }
 0x20d   : > { %1686 = vmatprep.mubr.bf16.mxu0 %v4968_v19 }
 0x211   : > { %3171 = vmatmul.mubr.msk.bf16.gmra.mrb[48].mxu1 %vm5385_vm5, %v5833_v32 }
 0x212   : > { %1292 = vmatprep.mubr.bf16.mxu1 %v5837_v5 }
 0x214   : > { %1687 = vmatmul.mubr.bf16.vlgmr.msra.gmra.mrb[48].mxu0 %v4968_v19 }
 0x215   : > { %4124 = vmatpush3.bf16.msra.mxu0 %v5708_v23  ;;  %1694 = vmatprep.mubr.bf16.mxu0 %v5363_v55  ;;  %v4626_v55 = vld [vmem:[#allocation7 + $0xa0] sm:$0xff]   ;;  %v4627_v23 = vld [vmem:[#allocation7 + $0xa8] sm:$0xff]  }
 0x216   : > { %4125 = vmatprep.subr.bf16.mxu0 %v4611_v22 }
 0x219   : > { %3175 = vmatmul.mubr.msk.bf16.gmra.mrb[52].mxu1 %vm5385_vm5, %v5873_v14  ;;  %4126 = vmatpush3.bf16.msra.mxu0 %v4611_v22 }
 0x21a   : > { %1300 = vmatprep.mubr.bf16.mxu1 %v5856_v29  ;;  %4127 = vmatprep.subr.bf16.mxu0 %v4614_v36 }
 0x21c   : > { %3291 = vmatmul.mubr.msk.bf16.gmra.mrb[52].mxu0 %vm5385_vm5, %v5391_v7  ;;  %v4628_v7 = vld [vmem:[#allocation7 + $0xb0] sm:$0xff]  }
 0x21d   : > { %1702 = vmatprep.mubr.bf16.mxu0 %v5360_v50  ;;  %4128 = vmatpush3.bf16.msra.mxu0 %v4614_v36 }
 0x21e   : > { %4129 = vmatprep.subr.bf16.mxu0 %v4617_v24 }
 0x221   : > { %3179 = vmatmul.mubr.msk.bf16.gmra.mrb[56].mxu1 %vm5385_vm5, %v5875_v38  ;;  %4130 = vmatpush3.bf16.msra.mxu0 %v4617_v24 }
 0x222   : > { %1308 = vmatprep.mubr.bf16.mxu1 %v5879_v59  ;;  %4131 = vmatprep.subr.bf16.mxu0 %v4626_v55 }
 0x224   : > { %3295 = vmatmul.mubr.msk.bf16.gmra.mrb[56].mxu0 %vm5385_vm5, %v5423_v30 }
 0x225   : > { %1710 = vmatprep.mubr.bf16.mxu0 %v5438_v44  ;;  %4132 = vmatpush3.bf16.msra.mxu0 %v4626_v55 }
 0x226   : > { %4133 = vmatprep.subr.bf16.mxu0 %v4627_v23 }
 0x229   : > { %3183 = vmatmul.mubr.msk.bf16.gmra.mrb[60].mxu1 %vm5385_vm5, %v5909_v37  ;;  %4134 = vmatpush3.bf16.msra.mxu0 %v4627_v23 }
 0x22a   : > { %1316 = vmatprep.mubr.bf16.mxu1 %v5895_v2  ;;  %4135 = vmatprep.subr.bf16.mxu0 %v4628_v7 }
 0x22c   : > { %3299 = vmatmul.mubr.msk.bf16.gmra.mrb[60].mxu0 %vm5385_vm5, %v5488_v27 }
 0x22d   : > { %1718 = vmatprep.mubr.bf16.mxu0 %v5433_v35  ;;  %4136 = vmatpush3.bf16.msra.mxu0 %v4628_v7 }
 0x22e   : > { %4137 = vmatprep.subr.bf16.mxu0 %v4629_v49 }
 0x231   : > { %3187 = vmatmul.mubr.msk.bf16.gmra.mrb[64].mxu1 %vm5385_vm5, %v5911_v45  ;;  %4138 = vmatpush3.bf16.msra.mxu0 %v4629_v49 }
 0x232   : > { %1324 = vmatprep.mubr.bf16.mxu1 %v5915_v58  ;;  %4171 = vmatprep.subr.bf16.mxu0 %v4630_v52 }
 0x234   : > { %3303 = vmatmul.mubr.msk.bf16.gmra.mrb[64].mxu0 %vm5385_vm5, %v5549_v39 }
 0x235   : > { %1726 = vmatprep.mubr.bf16.mxu0 %v5583_v26 }
 0x239   : > { %3191 = vmatmul.mubr.msk.bf16.gmra.mrb[68].mxu1 %vm5385_vm5, %v5943_v42 }
 0x23a   : > { %1332 = vmatprep.mubr.bf16.mxu1 %v5930_v43 }
 0x23c   : > { %3307 = vmatmul.mubr.msk.bf16.gmra.mrb[68].mxu0 %vm5385_vm5, %v5644_v41 }
 0x23d   : > { %1734 = vmatprep.mubr.bf16.mxu0 %v5648_v47 }
 0x241   : > { %3195 = vmatmul.mubr.msk.bf16.gmra.mrb[72].mxu1 %vm5385_vm5, %v5945_v3 }
 0x242   : > { %1340 = vmatprep.mubr.bf16.mxu1 %v5948_v53 }
 0x244   : > { %3311 = vmatmul.mubr.msk.bf16.gmra.mrb[72].mxu0 %vm5385_vm5, %v5714_v33 }
 0x245   : > { %1742 = vmatprep.mubr.bf16.mxu0 %v5725_v0 }
 0x249   : > { %3199 = vmatmul.mubr.msk.bf16.gmra.mrb[76].mxu1 %vm5385_vm5, %v5959_v28 }
 0x24a   : > { %2201 = vmatprep.mubr.bf16.mxu1 %v5360_v50  ;;  %v4631_v50 = vld [vmem:[#allocation7 + $0x208] sm:$0xff]  }
 0x24c   : > { %3315 = vmatmul.mubr.msk.bf16.gmra.mrb[76].mxu0 %vm5385_vm5, %v5779_v57 }
 0x24d   : > { %1750 = vmatprep.mubr.bf16.mxu0 %v5777_v31 }
 0x251   : > { %3435 = vmatmul.mubr.msk.bf16.vlgmr.msra.gmra.mrb[80].mxu1 %vm5385_vm5, %v5423_v30  ;;  %v4632_v30 = vld [vmem:[#allocation7 + $0x210] sm:$0xff]  }
 0x252   : > { %2209 = vmatprep.mubr.bf16.mxu1 %v5438_v44  ;;  %v4635_v44 = vld [vmem:[#allocation7 + $0x228] sm:$0xff]  }
 0x254   : > { %3319 = vmatmul.mubr.msk.bf16.gmra.mrb[80].mxu0 %vm5385_vm5, %v5806_v40 }
 0x255   : > { %1758 = vmatprep.mubr.bf16.mxu0 %v5801_v25 }
 0x259   : > { %3439 = vmatmul.mubr.msk.bf16.gmra.mrb[84].mxu1 %vm5385_vm5, %v5488_v27 }
 0x25a   : > { %2217 = vmatprep.mubr.bf16.mxu1 %v5433_v35  ;;  %v4633_v35 = vld [vmem:[#allocation7 + $0x218] sm:$0xff]  }
 0x25c   : > { %3323 = vmatmul.mubr.msk.bf16.gmra.mrb[84].mxu0 %vm5385_vm5, %v5833_v32 }
 0x25d   : > { %1766 = vmatprep.mubr.bf16.mxu0 %v5837_v5 }
 0x261   : > { %3443 = vmatmul.mubr.msk.bf16.gmra.mrb[88].mxu1 %vm5385_vm5, %v5549_v39 }
 0x262   : > { %2225 = vmatprep.mubr.bf16.mxu1 %v5583_v26 }
 0x264   : > { %3327 = vmatmul.mubr.msk.bf16.gmra.mrb[88].mxu0 %vm5385_vm5, %v5873_v14 }
 0x265   : > { %1774 = vmatprep.mubr.bf16.mxu0 %v5856_v29 }
 0x269   : > { %3447 = vmatmul.mubr.msk.bf16.gmra.mrb[92].mxu1 %vm5385_vm5, %v5644_v41 }
 0x26a   : > { %2233 = vmatprep.mubr.bf16.mxu1 %v5648_v47  ;;  %v4636_v47 = vld [vmem:[#allocation7 + $0x230] sm:$0xff]  }
 0x26c   : > { %3331 = vmatmul.mubr.msk.bf16.gmra.mrb[92].mxu0 %vm5385_vm5, %v5875_v38 }
 0x26d   : > { %1782 = vmatprep.mubr.bf16.mxu0 %v5879_v59 }
 0x271   : > { %3451 = vmatmul.mubr.msk.bf16.gmra.mrb[96].mxu1 %vm5385_vm5, %v5714_v33 }
 0x272   : > { %2241 = vmatprep.mubr.bf16.mxu1 %v5725_v0 }
 0x274   : > { %3335 = vmatmul.mubr.msk.bf16.gmra.mrb[96].mxu0 %vm5385_vm5, %v5909_v37 }
 0x275   : > { %1790 = vmatprep.mubr.bf16.mxu0 %v5895_v2 }
 0x279   : > { %3455 = vmatmul.mubr.msk.bf16.gmra.mrb[100].mxu1 %vm5385_vm5, %v5779_v57 }
 0x27a   : > { %2249 = vmatprep.mubr.bf16.mxu1 %v5777_v31  ;;  %v4637_v31 = vld [vmem:[#allocation7 + $0x238] sm:$0xff]  }
 0x27c   : > { %3339 = vmatmul.mubr.msk.bf16.gmra.mrb[100].mxu0 %vm5385_vm5, %v5911_v45 }
 0x27d   : > { %1798 = vmatprep.mubr.bf16.mxu0 %v5915_v58 }
 0x281   : > { %3459 = vmatmul.mubr.msk.bf16.gmra.mrb[104].mxu1 %vm5385_vm5, %v5806_v40 }
 0x282   : > { %2257 = vmatprep.mubr.bf16.mxu1 %v5801_v25  ;;  %v6788_v25 = vld [vmem:[#allocation20_spill] sm:$0xff] }
 0x284   : > { %3343 = vmatmul.mubr.msk.bf16.gmra.mrb[104].mxu0 %vm5385_vm5, %v5943_v42 }
 0x285   : > { %1806 = vmatprep.mubr.bf16.mxu0 %v5930_v43 }
 0x289   : > { %3463 = vmatmul.mubr.msk.bf16.gmra.mrb[108].mxu1 %vm5385_vm5, %v5833_v32 }
 0x28a   : > { %2265 = vmatprep.mubr.bf16.mxu1 %v5837_v5 }
 0x28c   : > { %3347 = vmatmul.mubr.msk.bf16.gmra.mrb[108].mxu0 %vm5385_vm5, %v5945_v3 }
 0x28d   : > { %4139 = vmatprep.mubr.bf16.mxu0 %v4968_v19 }
 0x291   : > { %3467 = vmatmul.mubr.msk.bf16.gmra.mrb[112].mxu1 %vm5385_vm5, %v5873_v14 }
 0x292   : > { %2273 = vmatprep.mubr.bf16.mxu1 %v5856_v29 }
 0x294   : > { %4140 = vmatmul.mubr.msk.bf16.vlgmr.msra.gmra.mrb[16].mxu0 %vm5403_vm6, %v5420_v21  ;;  %v4634_v21 = vld [vmem:[#allocation7 + $0x220] sm:$0xff]  }
 0x295   : > { %4172 = vmatpush3.bf16.msra.mxu0 %v4630_v52  ;;  %4143 = vmatprep.mubr.msk.bf16.mxu0 %vm5403_vm6, %v5375_v63 }
 0x296   : > { %4173 = vmatprep.subr.bf16.mxu0 %v4631_v50 }
 0x299   : > { %3471 = vmatmul.mubr.msk.bf16.gmra.mrb[116].mxu1 %vm5385_vm5, %v5875_v38  ;;  %4174 = vmatpush3.bf16.msra.mxu0 %v4631_v50  ;;  %v6789_v38 = vld [vmem:[#allocation21_spill] sm:$0xff] }
 0x29a   : > { %2281 = vmatprep.mubr.bf16.mxu1 %v5879_v59  ;;  %4175 = vmatprep.subr.bf16.mxu0 %v4632_v30  ;;  %v4640_v50 = vld [vmem:[#allocation8 + $0x10] sm:$0xff]  }
 0x29c   : > { %4144 = vmatmul.mubr.msk.bf16.gmra.mrb[20].mxu0 %vm5403_vm6, %v5464_v6 }
 0x29d   : > { %4147 = vmatprep.mubr.msk.bf16.mxu0 %vm5403_vm6, %v5457_v61  ;;  %4176 = vmatpush3.bf16.msra.mxu0 %v4632_v30 }
 0x29e   : > { %4177 = vmatprep.subr.bf16.mxu0 %v4633_v35 }
 0x2a1   : > { %3475 = vmatmul.mubr.msk.bf16.gmra.mrb[120].mxu1 %vm5385_vm5, %v5909_v37  ;;  %4178 = vmatpush3.bf16.msra.mxu0 %v4633_v35 }
 0x2a2   : > { %2289 = vmatprep.mubr.bf16.mxu1 %v5895_v2  ;;  %4179 = vmatprep.subr.bf16.mxu0 %v4634_v21  ;;  %v6790_v2 = vld [vmem:[#allocation22_spill] sm:$0xff] }
 0x2a4   : > { %4148 = vmatmul.mubr.msk.bf16.gmra.mrb[24].mxu0 %vm5403_vm6, %v5539_v18  ;;  %v3611_v27 = vpop.f32.mrb[16].mxu1 }
 0x2a5   : > { %4151 = vmatprep.mubr.msk.bf16.mxu0 %vm5403_vm6, %v5532_v17  ;;  %v3612_v39 = vpop.f32.mrb[17].mxu1  ;;  %4180 = vmatpush3.bf16.msra.mxu0 %v4634_v21 }
 0x2a6   : > { %v6132_v26 = vadd.f32 %v3612_v39, %v3611_v27  ;;  %v3614_v41 = vpop.f32.mrb[18].mxu1  ;;  %4181 = vmatprep.subr.bf16.mxu0 %v4635_v44 }
 0x2a7   : > { %v3615_v33 = vpop.f32.mrb[19].mxu1 }
 0x2a8   : > { %v6134_v0 = vadd.f32 %v3615_v33, %v3614_v41  ;;  %v4641_v33 = vld [vmem:[#allocation8 + $0x18] sm:$0xff]  }
 0x2a9   : > { %3479 = vmatmul.mubr.msk.bf16.gmra.mrb[124].mxu1 %vm5385_vm5, %v5911_v45  ;;  %4182 = vmatpush3.bf16.msra.mxu0 %v4635_v44  ;;  %v4638_v45 = vld [vmem:[#allocation8] sm:$0xff]  }
 0x2aa   : > { %2297 = vmatprep.mubr.bf16.mxu1 %v5915_v58  ;;  %4183 = vmatprep.subr.bf16.mxu0 %v4636_v47 }
 0x2ab   : > { %4219 = vmatprep.subr.bf16.mxu1 %v4638_v45 }
 0x2ac   : > { %4152 = vmatmul.mubr.msk.bf16.gmra.mrb[28].mxu0 %vm5403_vm6, %v5601_v56  ;;  %v3617_v57 = vpop.f32.mrb[20].mxu1  ;;  %4220 = vmatpush3.bf16.msra.mxu1 %v4638_v45 }
 0x2ad   : > { %4155 = vmatprep.mubr.msk.bf16.mxu0 %vm5403_vm6, %v6788_v25  ;;  %v3618_v40 = vpop.f32.mrb[21].mxu1  ;;  %4184 = vmatpush3.bf16.msra.mxu0 %v4636_v47 }
 0x2ae   : > { %v6146_v32 = vadd.f32 %v3618_v40, %v3617_v57  ;;  %v3620_v5 = vpop.f32.mrb[22].mxu1  ;;  %4185 = vmatprep.subr.bf16.mxu0 %v4637_v31  ;;  %4221 = vmatprep.subr.bf16.mxu1 %v4639_v12 }
 0x2af   : > { %v3621_v29 = vpop.f32.mrb[23].mxu1 }
 0x2b0   : > { %v6148_v14 = vadd.f32 %v3621_v29, %v3620_v5  ;;  %4222 = vmatpush3.bf16.msra.mxu1 %v4639_v12  ;;  %v4642_v12 = vld [vmem:[#allocation8 + $0x20] sm:$0xff]  }
 0x2b1   : > { %3483 = vmatmul.mubr.msk.bf16.gmra.mrb[128].mxu1 %vm5385_vm5, %v5943_v42  ;;  %4186 = vmatpush3.bf16.msra.mxu0 %v4637_v31 }
 0x2b2   : > { %2305 = vmatprep.mubr.bf16.mxu1 %v5930_v43  ;;  %v6791_v43 = vld [vmem:[#allocation23_spill] sm:$0xff]  ;;  %4223 = vmatprep.subr.bf16.mxu1 %v4640_v50 }
 0x2b4   : > { %4156 = vmatmul.mubr.msk.bf16.gmra.mrb[32].mxu0 %vm5403_vm6, %v6789_v38  ;;  %v3623_v59 = vpop.f32.mrb[24].mxu1  ;;  %4224 = vmatpush3.bf16.msra.mxu1 %v4640_v50 }
 0x2b5   : > { %4159 = vmatprep.mubr.msk.bf16.mxu0 %vm5403_vm6, %v6790_v2  ;;  %v3624_v37 = vpop.f32.mrb[25].mxu1  ;;  %4225 = vmatprep.subr.bf16.mxu1 %v4641_v33 }
 0x2b6   : > { %v6160_v58 = vadd.f32 %v3624_v37, %v3623_v59  ;;  %v3626_v46 = vpop.f32.mrb[26].mxu1 }
 0x2b7   : > { %v3627_v13 = vpop.f32.mrb[27].mxu1 }
 0x2b8   : > { %v6162_v34 = vadd.f32 %v3627_v13, %v3626_v46  ;;  %4226 = vmatpush3.bf16.msra.mxu1 %v4641_v33 }
 0x2b9   : > { %3487 = vmatmul.mubr.msk.bf16.gmra.mrb[132].mxu1 %vm5385_vm5, %v5945_v3  ;;  %4227 = vmatprep.subr.bf16.mxu1 %v4642_v12 }
 0x2ba   : > { %2313 = vmatprep.mubr.bf16.mxu1 %v5948_v53 }
 0x2bc   : > { %4160 = vmatmul.mubr.msk.bf16.gmra.mrb[36].mxu0 %vm5403_vm6, %v6791_v43  ;;  %v3629_v54 = vpop.f32.mrb[28].mxu1  ;;  %4228 = vmatpush3.bf16.msra.mxu1 %v4642_v12 }
 0x2bd   : > { %4163 = vmatprep.mubr.msk.bf16.mxu0 %vm5403_vm6, %v5744_v1  ;;  %v3630_v20 = vpop.f32.mrb[29].mxu1 }
 0x2be   : > { %v6174_v51 = vadd.f32 %v3630_v20, %v3629_v54  ;;  %v3632_v10 = vpop.f32.mrb[30].mxu1 }
 0x2bf   : > { %v3633_v42 = vpop.f32.mrb[31].mxu1 }
 0x2c0   : > { %v6176_v9 = vadd.f32 %v3633_v42, %v3632_v10 }
 0x2c1   : > { %3491 = vmatmul.mubr.msk.bf16.gmra.mrb[136].mxu1 %vm5385_vm5, %v5959_v28 }
 0x2c2   : > { %2321 = vmatprep.mubr.bf16.mxu1 %v4968_v19 }
 0x2c4   : > { %4164 = vmatmul.mubr.msk.bf16.gmra.mrb[40].mxu0 %vm5403_vm6, %v5767_v15  ;;  %v3635_v3 = vpop.f32.mrb[32].mxu1 }
 0x2c5   : > { %4167 = vmatprep.mubr.msk.bf16.mxu0 %vm5403_vm6, %v5785_v8  ;;  %v3636_v53 = vpop.f32.mrb[33].mxu1 }
 0x2c6   : > { %v6188_v60 = vadd.f32 %v3636_v53, %v3635_v3  ;;  %v3638_v11 = vpop.f32.mrb[34].mxu1 }
 0x2c7   : > { %v3639_v22 = vpop.f32.mrb[35].mxu1 }
 0x2c8   : > { %v6190_v4 = vadd.f32 %v3639_v22, %v3638_v11 }
 0x2c9   : > { %2322 = vmatmul.mubr.bf16.gmra.mrb[140].mxu1 %v4968_v19 }
 0x2cc   : > { %4168 = vmatmul.mubr.msk.bf16.gmra.mrb[44].mxu0 %vm5403_vm6, %v5831_v48  ;;  %v3641_v28 = vpop.f32.mrb[36].mxu1 }
 0x2cd   : > { %4187 = vmatprep.mubr.msk.bf16.mxu0 %vm5403_vm6, %v5375_v63  ;;  %v3642_v36 = vpop.f32.mrb[37].mxu1 }
 0x2ce   : > { %v6199_v24 = vadd.f32 %v3642_v36, %v3641_v28  ;;  %v3644_v55 = vpop.f32.mrb[38].mxu1 }
 0x2cf   : > { %v3645_v23 = vpop.f32.mrb[39].mxu1 }
 0x2d0   : > { %v6201_v7 = vadd.f32 %v3645_v23, %v3644_v55 }
 0x2d4   : > { %4188 = vmatmul.mubr.msk.bf16.vlgmr.msra.gmra.mrb[16].mxu0 %vm5403_vm6, %v5464_v6  ;;  %v3647_v49 = vpop.f32.mrb[40].mxu1 }
 0x2d5   : > { %4191 = vmatprep.mubr.msk.bf16.mxu0 %vm5403_vm6, %v5457_v61  ;;  %v3648_v52 = vpop.f32.mrb[41].mxu1 }
 0x2d6   : > { %v6209_v30 = vadd.f32 %v3648_v52, %v3647_v49  ;;  %v3650_v63 = vpop.f32.mrb[42].mxu1 }
 0x2d7   : > { %v3651_v35 = vpop.f32.mrb[43].mxu1 }
 0x2d8   : > { %v6211_v21 = vadd.f32 %v3651_v35, %v3650_v63 }
 0x2dc   : > { %4192 = vmatmul.mubr.msk.bf16.gmra.mrb[20].mxu0 %vm5403_vm6, %v5539_v18  ;;  %v3653_v6 = vpop.f32.mrb[44].mxu1 }
 0x2dd   : > { %4195 = vmatprep.mubr.msk.bf16.mxu0 %vm5403_vm6, %v5532_v17  ;;  %v3654_v61 = vpop.f32.mrb[45].mxu1 }
 0x2de   : > { %v6219_v44 = vadd.f32 %v3654_v61, %v3653_v6  ;;  %v3656_v27 = vpop.f32.mrb[46].mxu1 }
 0x2df   : > { %v3657_v39 = vpop.f32.mrb[47].mxu1 }
 0x2e0   : > { %v6221_v41 = vadd.f32 %v3657_v39, %v3656_v27 }
 0x2e4   : > { %4196 = vmatmul.mubr.msk.bf16.gmra.mrb[24].mxu0 %vm5403_vm6, %v5601_v56  ;;  %v3659_v47 = vpop.f32.mrb[48].mxu1 }
 0x2e5   : > { %4199 = vmatprep.mubr.msk.bf16.mxu0 %vm5403_vm6, %v6788_v25  ;;  %v3660_v18 = vpop.f32.mrb[49].mxu1 }
 0x2e6   : > { %v6229_v31 = vadd.f32 %v3660_v18, %v3659_v47  ;;  %v3662_v17 = vpop.f32.mrb[50].mxu1 }
 0x2e7   : > { %v3747_v57 = vpop.f32.mrb[48].mxu0  ;;  %v3663_v40 = vpop.f32.mrb[51].mxu1 }
 0x2e8   : > { %v3748_v5 = vpop.f32.mrb[49].mxu0  ;;  %v6231_v29 = vadd.f32 %v3663_v40, %v3662_v17  ;;  %v4643_v40 = vld [vmem:[#allocation8 + $0x28] sm:$0xff]  }
 0x2e9   : > { %v3749_v59 = vadd.f32 %v3748_v5, %v3747_v57  ;;  %v3750_v37 = vpop.f32.mrb[50].mxu0  ;;  %4229 = vmatprep.subr.bf16.mxu1 %v4643_v40 }
 0x2ea   : > { %v3751_v56 = vpop.f32.mrb[51].mxu0  ;;  %4230 = vmatpush3.bf16.msra.mxu1 %v4643_v40 }
 0x2eb   : > { %v6234_v45 = vadd.f32 %v3749_v59, %v6132_v26  ;;  %v3752_v46 = vadd.f32 %v3751_v56, %v3750_v37 }
 0x2ec   : > { %4200 = vmatmul.mubr.msk.bf16.gmra.mrb[28].mxu0 %vm5403_vm6, %v6789_v38  ;;  %v3665_v25 = vpop.f32.mrb[52].mxu1 }
 0x2ed   : > { %v6240_v13 = vadd.f32 %v3752_v46, %v6134_v0  ;;  %4203 = vmatprep.mubr.msk.bf16.mxu0 %vm5403_vm6, %v6790_v2  ;;  %v3666_v54 = vpop.f32.mrb[53].mxu1 }
 0x2ee   : > { %v6245_v20 = vadd.f32 %v3666_v54, %v3665_v25  ;;  %v3668_v10 = vpop.f32.mrb[54].mxu1 }
 0x2ef   : > { %v3753_v42 = vpop.f32.mrb[52].mxu0  ;;  %v3669_v26 = vpop.f32.mrb[55].mxu1 }
 0x2f0   : > { %v3754_v3 = vpop.f32.mrb[53].mxu0  ;;  %v6247_v53 = vadd.f32 %v3669_v26, %v3668_v10 }
 0x2f1   : > { %v3755_v11 = vadd.f32 %v3754_v3, %v3753_v42  ;;  %v3756_v38 = vpop.f32.mrb[54].mxu0 }
 0x2f2   : > { %v3757_v22 = vpop.f32.mrb[55].mxu0 }
 0x2f3   : > { %v6250_v0 = vadd.f32 %v3755_v11, %v6146_v32  ;;  %v3758_v28 = vadd.f32 %v3757_v22, %v3756_v38 }
 0x2f4   : > { %4204 = vmatmul.mubr.msk.bf16.gmra.mrb[32].mxu0 %vm5403_vm6, %v6791_v43  ;;  %v3671_v2 = vpop.f32.mrb[56].mxu1 }
 0x2f5   : > { %v6256_v36 = vadd.f32 %v3758_v28, %v6148_v14  ;;  %4207 = vmatprep.mubr.msk.bf16.mxu0 %vm5403_vm6, %v5744_v1  ;;  %v3672_v55 = vpop.f32.mrb[57].mxu1 }
 0x2f6   : > { %v6261_v23 = vadd.f32 %v3672_v55, %v3671_v2  ;;  %v3674_v49 = vpop.f32.mrb[58].mxu1 }
 0x2f7   : > { %v3759_v32 = vpop.f32.mrb[56].mxu0  ;;  %v3675_v52 = vpop.f32.mrb[59].mxu1 }
 0x2f8   : > { %v3760_v50 = vpop.f32.mrb[57].mxu0  ;;  %v6263_v63 = vadd.f32 %v3675_v52, %v3674_v49  ;;  %v4644_v52 = vld [vmem:[#allocation8 + $0x30] sm:$0xff]  }
 0x2f9   : > { %v3761_v35 = vadd.f32 %v3760_v50, %v3759_v32  ;;  %v3762_v6 = vpop.f32.mrb[58].mxu0  ;;  %4231 = vmatprep.subr.bf16.mxu1 %v4644_v52 }
 0x2fa   : > { %v3763_v43 = vpop.f32.mrb[59].mxu0  ;;  %4232 = vmatpush3.bf16.msra.mxu1 %v4644_v52 }
 0x2fb   : > { %v6266_v61 = vadd.f32 %v3761_v35, %v6160_v58  ;;  %v3764_v14 = vadd.f32 %v3763_v43, %v3762_v6 }
 0x2fc   : > { %4208 = vmatmul.mubr.msk.bf16.gmra.mrb[36].mxu0 %vm5403_vm6, %v5767_v15  ;;  %v3677_v1 = vpop.f32.mrb[60].mxu1 }
 0x2fd   : > { %v6272_v27 = vadd.f32 %v3764_v14, %v6162_v34  ;;  %4211 = vmatprep.mubr.msk.bf16.mxu0 %vm5403_vm6, %v5785_v8  ;;  %v3678_v39 = vpop.f32.mrb[61].mxu1 }
 0x2fe   : > { %v6277_v47 = vadd.f32 %v3678_v39, %v3677_v1  ;;  %v3680_v18 = vpop.f32.mrb[62].mxu1 }
 0x2ff   : > { %v3765_v33 = vpop.f32.mrb[60].mxu0  ;;  %v3681_v58 = vpop.f32.mrb[63].mxu1 }
 0x300   : > { %v3766_v17 = vpop.f32.mrb[61].mxu0  ;;  %v6279_v57 = vadd.f32 %v3681_v58, %v3680_v18 }
 0x301   : > { %v3767_v5 = vadd.f32 %v3766_v17, %v3765_v33  ;;  %v3768_v15 = vpop.f32.mrb[62].mxu0 }
 0x302   : > { %v3769_v59 = vpop.f32.mrb[63].mxu0 }
 0x303   : > { %v6282_v34 = vadd.f32 %v3767_v5, %v6174_v51  ;;  %v3770_v37 = vadd.f32 %v3769_v59, %v3768_v15 }
 0x304   : > { %4212 = vmatmul.mubr.msk.bf16.gmra.mrb[40].mxu0 %vm5403_vm6, %v5831_v48  ;;  %v3683_v8 = vpop.f32.mrb[64].mxu1 }
 0x305   : > { %v6288_v56 = vadd.f32 %v3770_v37, %v6176_v9  ;;  %4215 = vmatprep.mubr.msk.bf16.mxu0 %vm5403_vm6, %v5823_v62  ;;  %v3684_v46 = vpop.f32.mrb[65].mxu1 }
 0x306   : > { %v6293_v25 = vadd.f32 %v3684_v46, %v3683_v8  ;;  %v3686_v54 = vpop.f32.mrb[66].mxu1 }
 0x307   : > { %v3771_v51 = vpop.f32.mrb[64].mxu0  ;;  %v3687_v10 = vpop.f32.mrb[67].mxu1 }
 0x308   : > { %v3772_v42 = vpop.f32.mrb[65].mxu0  ;;  %v6295_v26 = vadd.f32 %v3687_v10, %v3686_v54 }
 0x309   : > { %v3773_v3 = vadd.f32 %v3772_v42, %v3771_v51  ;;  %v3774_v12 = vpop.f32.mrb[66].mxu0 }
 0x30a   : > { %v3775_v48 = vpop.f32.mrb[67].mxu0 }
 0x30b   : > { %v6298_v11 = vadd.f32 %v3773_v3, %v6188_v60  ;;  %v3776_v9 = vadd.f32 %v3775_v48, %v3774_v12  ;;  %v4645_v12 = vld [vmem:[#allocation8 + $0x38] sm:$0xff]  }
 0x30c   : > { %4216 = vmatmul.mubr.bf16.gmra.mrb[44].mxu0 %v4968_v19  ;;  %v3689_v16 = vpop.f32.mrb[68].mxu1  ;;  %4233 = vmatprep.subr.bf16.mxu1 %v4645_v12 }
 0x30d   : > { %v6302_v62 = vadd.f32 %v3776_v9, %v6190_v4  ;;  %v3690_v38 = vpop.f32.mrb[69].mxu1  ;;  %4234 = vmatpush3.bf16.msra.mxu1 %v4645_v12 }
 0x30e   : > { %v6304_v22 = vadd.f32 %v3690_v38, %v3689_v16  ;;  %v3692_v28 = vpop.f32.mrb[70].mxu1 }
 0x30f   : > { %v3777_v2 = vpop.f32.mrb[68].mxu0  ;;  %v3693_v55 = vpop.f32.mrb[71].mxu1 }
 0x310   : > { %v3778_v49 = vpop.f32.mrb[69].mxu0  ;;  %v6306_v32 = vadd.f32 %v3693_v55, %v3692_v28 }
 0x311   : > { %v3779_v50 = vadd.f32 %v3778_v49, %v3777_v2  ;;  %v3780_v60 = vpop.f32.mrb[70].mxu0 }
 0x312   : > { %v3781_v35 = vpop.f32.mrb[71].mxu0 }
 0x313   : > { %v6309_v19 = vadd.f32 %v3779_v50, %v6199_v24  ;;  %v3782_v6 = vadd.f32 %v3781_v35, %v3780_v60 }
 0x314   : > { %v3695_v4 = vpop.f32.mrb[72].mxu1 }
 0x315   : > { %v6312_v43 = vadd.f32 %v3782_v6, %v6201_v7  ;;  %v3696_v14 = vpop.f32.mrb[73].mxu1 }
 0x316   : > { %v6314_v1 = vadd.f32 %v3696_v14, %v3695_v4  ;;  %v3698_v39 = vpop.f32.mrb[74].mxu1 }
 0x317   : > { %v3783_v18 = vpop.f32.mrb[72].mxu0  ;;  %v3699_v33 = vpop.f32.mrb[75].mxu1 }
 0x318   : > { %v3784_v58 = vpop.f32.mrb[73].mxu0  ;;  %v6316_v17 = vadd.f32 %v3699_v33, %v3698_v39 }
 0x319   : > { %v3785_v40 = vadd.f32 %v3784_v58, %v3783_v18  ;;  %v3786_v5 = vpop.f32.mrb[74].mxu0 }
 0x31a   : > { %v3787_v15 = vpop.f32.mrb[75].mxu0 }
 0x31b   : > { %v6319_v24 = vadd.f32 %v3785_v40, %v6209_v30  ;;  %v3788_v59 = vadd.f32 %v3787_v15, %v3786_v5 }
 0x31c   : > { %v3701_v37 = vpop.f32.mrb[76].mxu1 }
 0x31d   : > { %v6322_v7 = vadd.f32 %v3788_v59, %v6211_v21  ;;  %v3702_v8 = vpop.f32.mrb[77].mxu1 }
 0x31e   : > { %v6324_v46 = vadd.f32 %v3702_v8, %v3701_v37  ;;  %v3704_v54 = vpop.f32.mrb[78].mxu1 }
 0x31f   : > { %v3789_v51 = vpop.f32.mrb[76].mxu0  ;;  %v3705_v10 = vpop.f32.mrb[79].mxu1 }
 0x320   : > { %v3790_v42 = vpop.f32.mrb[77].mxu0  ;;  %v6326_v3 = vadd.f32 %v3705_v10, %v3704_v54 }
 0x321   : > { %v3791_v48 = vadd.f32 %v3790_v42, %v3789_v51  ;;  %v3792_v9 = vpop.f32.mrb[78].mxu0 }
 0x322   : > { %v3793_v16 = vpop.f32.mrb[79].mxu0 }
 0x323   : > { %v6329_v30 = vadd.f32 %v3791_v48, %v6219_v44  ;;  %v3794_v38 = vadd.f32 %v3793_v16, %v3792_v9 }
 0x324   : > { %v3883_v21 = vpop.f32.mrb[80].mxu1 }
 0x325   : > { %v6332_v28 = vadd.f32 %v3794_v38, %v6221_v41  ;;  %v3884_v2 = vpop.f32.mrb[81].mxu1 }
 0x326   : > { %v3885_v55 = vadd.f32 %v3884_v2, %v3883_v21  ;;  %v3886_v49 = vpop.f32.mrb[82].mxu1 }
 0x327   : > { %v3795_v52 = vpop.f32.mrb[80].mxu0  ;;  %v3887_v50 = vpop.f32.mrb[83].mxu1 }
 0x328   : > { %v3796_v60 = vpop.f32.mrb[81].mxu0  ;;  %v3888_v35 = vadd.f32 %v3887_v50, %v3886_v49  ;;  %v6335_v6 = vadd.f32 %v6234_v45, %v3885_v55 }
 0x329   : > { %v3797_v4 = vadd.f32 %v3796_v60, %v3795_v52  ;;  %v3798_v14 = vpop.f32.mrb[82].mxu0 }
 0x32a   : > { %v3799_v44 = vpop.f32.mrb[83].mxu0  ;;  %v6338_v39 = vadd.f32 %v6240_v13, %v3888_v35 }
 0x32b   : > { %v6341_v18 = vadd.f32 %v3797_v4, %v6229_v31  ;;  %v3800_v41 = vadd.f32 %v3799_v44, %v3798_v14 }
 0x32c   : > { %v3889_v33 = vpop.f32.mrb[84].mxu1 }
 0x32d   : > { %v6344_v58 = vadd.f32 %v3800_v41, %v6231_v29  ;;  %v3890_v40 = vpop.f32.mrb[85].mxu1 }
 0x32e   : > { %v3891_v5 = vadd.f32 %v3890_v40, %v3889_v33  ;;  %v3892_v15 = vpop.f32.mrb[86].mxu1 }
 0x32f   : > { %v3801_v59 = vpop.f32.mrb[84].mxu0  ;;  %v3893_v45 = vpop.f32.mrb[87].mxu1 }
 0x330   : > { %v3802_v37 = vpop.f32.mrb[85].mxu0  ;;  %v3894_v8 = vadd.f32 %v3893_v45, %v3892_v15  ;;  %v6347_v54 = vadd.f32 %v6250_v0, %v3891_v5 }
 0x331   : > { %v3803_v13 = vadd.f32 %v3802_v37, %v3801_v59  ;;  %v3804_v51 = vpop.f32.mrb[86].mxu0 }
 0x332   : > { %v3805_v10 = vpop.f32.mrb[87].mxu0  ;;  %v6350_v31 = vadd.f32 %v6256_v36, %v3894_v8 }
 0x333   : > { %v6353_v42 = vadd.f32 %v3803_v13, %v6245_v20  ;;  %v3806_v29 = vadd.f32 %v3805_v10, %v3804_v51 }
 0x334   : > { %v3895_v12 = vpop.f32.mrb[88].mxu1 }
 0x335   : > { %v6356_v48 = vadd.f32 %v3806_v29, %v6247_v53  ;;  %v3896_v9 = vpop.f32.mrb[89].mxu1 }
 0x336   : > { %v3897_v16 = vadd.f32 %v3896_v9, %v3895_v12  ;;  %v3898_v38 = vpop.f32.mrb[90].mxu1 }
 0x337   : > { %v3807_v21 = vpop.f32.mrb[88].mxu0  ;;  %v3899_v0 = vpop.f32.mrb[91].mxu1 }
 0x338   : > { %v3808_v2 = vpop.f32.mrb[89].mxu0  ;;  %v3900_v55 = vadd.f32 %v3899_v0, %v3898_v38  ;;  %v6359_v49 = vadd.f32 %v6266_v61, %v3897_v16 }
 0x339   : > { %v3809_v36 = vadd.f32 %v3808_v2, %v3807_v21  ;;  %v3810_v52 = vpop.f32.mrb[90].mxu0 }
 0x33a   : > { %v3811_v50 = vpop.f32.mrb[91].mxu0  ;;  %v6362_v20 = vadd.f32 %v6272_v27, %v3900_v55 }
 0x33b   : > { %v6365_v60 = vadd.f32 %v3809_v36, %v6261_v23  ;;  %v3812_v53 = vadd.f32 %v3811_v50, %v3810_v52 }
 0x33c   : > { %v3901_v35 = vpop.f32.mrb[92].mxu1 }
 0x33d   : > { %v6368_v4 = vadd.f32 %v3812_v53, %v6263_v63  ;;  %v3902_v14 = vpop.f32.mrb[93].mxu1 }
 0x33e   : > { %v3903_v44 = vadd.f32 %v3902_v14, %v3901_v35  ;;  %v3904_v41 = vpop.f32.mrb[94].mxu1 }
 0x33f   : > { %v3813_v33 = vpop.f32.mrb[92].mxu0  ;;  %v3905_v61 = vpop.f32.mrb[95].mxu1 }
 0x340   : > { %v3814_v40 = vpop.f32.mrb[93].mxu0  ;;  %v3906_v5 = vadd.f32 %v3905_v61, %v3904_v41  ;;  %v6371_v15 = vadd.f32 %v6282_v34, %v3903_v44 }
 0x341   : > { %v3815_v27 = vadd.f32 %v3814_v40, %v3813_v33  ;;  %v3816_v59 = vpop.f32.mrb[94].mxu0 }
 0x342   : > { %v3817_v45 = vpop.f32.mrb[95].mxu0  ;;  %v6374_v23 = vadd.f32 %v6288_v56, %v3906_v5 }
 0x343   : > { %v6377_v37 = vadd.f32 %v3815_v27, %v6277_v47  ;;  %v3818_v63 = vadd.f32 %v3817_v45, %v3816_v59 }
 0x344   : > { %v3907_v8 = vpop.f32.mrb[96].mxu1 }
 0x345   : > { %v6380_v13 = vadd.f32 %v3818_v63, %v6279_v57  ;;  %v3908_v51 = vpop.f32.mrb[97].mxu1 }
 0x346   : > { %v3909_v10 = vadd.f32 %v3908_v51, %v3907_v8  ;;  %v3910_v29 = vpop.f32.mrb[98].mxu1 }
 0x347   : > { %v3819_v12 = vpop.f32.mrb[96].mxu0  ;;  %v3911_v34 = vpop.f32.mrb[99].mxu1 }
 0x348   : > { %v3820_v9 = vpop.f32.mrb[97].mxu0  ;;  %v3912_v16 = vadd.f32 %v3911_v34, %v3910_v29  ;;  %v6383_v38 = vadd.f32 %v6298_v11, %v3909_v10 }
 0x349   : > { %v3821_v56 = vadd.f32 %v3820_v9, %v3819_v12  ;;  %v3822_v21 = vpop.f32.mrb[98].mxu0 }
 0x34a   : > { %v3823_v0 = vpop.f32.mrb[99].mxu0  ;;  %v6386_v47 = vadd.f32 %v6302_v62, %v3912_v16 }
 0x34b   : > { %v6389_v2 = vadd.f32 %v3821_v56, %v6293_v25  ;;  %v3824_v57 = vadd.f32 %v3823_v0, %v3822_v21 }
 0x34c   : > { %v3913_v55 = vpop.f32.mrb[100].mxu1 }
 0x34d   : > { %v6392_v36 = vadd.f32 %v3824_v57, %v6295_v26  ;;  %v3914_v52 = vpop.f32.mrb[101].mxu1 }
 0x34e   : > { %v3915_v50 = vadd.f32 %v3914_v52, %v3913_v55  ;;  %v3916_v53 = vpop.f32.mrb[102].mxu1 }
 0x34f   : > { %v3825_v35 = vpop.f32.mrb[100].mxu0  ;;  %v3917_v11 = vpop.f32.mrb[103].mxu1 }
 0x350   : > { %v3826_v14 = vpop.f32.mrb[101].mxu0  ;;  %v3918_v44 = vadd.f32 %v3917_v11, %v3916_v53  ;;  %v6395_v41 = vadd.f32 %v6309_v19, %v3915_v50 }
 0x351   : > { %v3827_v62 = vadd.f32 %v3826_v14, %v3825_v35  ;;  %v3828_v33 = vpop.f32.mrb[102].mxu0 }
 0x352   : > { %v3829_v61 = vpop.f32.mrb[103].mxu0  ;;  %v6398_v25 = vadd.f32 %v6312_v43, %v3918_v44 }
 0x353   : > { %v6401_v40 = vadd.f32 %v3827_v62, %v6304_v22  ;;  %v3830_v26 = vadd.f32 %v3829_v61, %v3828_v33 }
 0x354   : > { %v3919_v5 = vpop.f32.mrb[104].mxu1 }
 0x355   : > { %v6404_v27 = vadd.f32 %v3830_v26, %v6306_v32  ;;  %v3920_v59 = vpop.f32.mrb[105].mxu1 }
 0x356   : > { %v3921_v45 = vadd.f32 %v3920_v59, %v3919_v5  ;;  %v3922_v63 = vpop.f32.mrb[106].mxu1 }
 0x357   : > { %v3831_v8 = vpop.f32.mrb[104].mxu0  ;;  %v3923_v19 = vpop.f32.mrb[107].mxu1 }
 0x358   : > { %v3832_v51 = vpop.f32.mrb[105].mxu0  ;;  %v3924_v10 = vadd.f32 %v3923_v19, %v3922_v63  ;;  %v6407_v29 = vadd.f32 %v6319_v24, %v3921_v45 }
 0x359   : > { %v3833_v43 = vadd.f32 %v3832_v51, %v3831_v8  ;;  %v3834_v12 = vpop.f32.mrb[106].mxu0 }
 0x35a   : > { %v3835_v34 = vpop.f32.mrb[107].mxu0  ;;  %v6410_v22 = vadd.f32 %v6322_v7, %v3924_v10 }
 0x35b   : > { %v6413_v9 = vadd.f32 %v3833_v43, %v6314_v1  ;;  %v3836_v32 = vadd.f32 %v3835_v34, %v3834_v12 }
 0x35c   : > { %v3925_v16 = vpop.f32.mrb[108].mxu1 }
 0x35d   : > { %v6416_v56 = vadd.f32 %v3836_v32, %v6316_v17  ;;  %v3926_v21 = vpop.f32.mrb[109].mxu1 }
 0x35e   : > { %v3927_v0 = vadd.f32 %v3926_v21, %v3925_v16  ;;  %v3928_v57 = vpop.f32.mrb[110].mxu1 }
 0x35f   : > { %v3837_v55 = vpop.f32.mrb[108].mxu0  ;;  %v3929_v24 = vpop.f32.mrb[111].mxu1 }
 0x360   : > { %v3838_v52 = vpop.f32.mrb[109].mxu0  ;;  %v3930_v50 = vadd.f32 %v3929_v24, %v3928_v57  ;;  %v6419_v53 = vadd.f32 %v6329_v30, %v3927_v0 }
 0x361   : > { %v3839_v7 = vadd.f32 %v3838_v52, %v3837_v55  ;;  %v3840_v35 = vpop.f32.mrb[110].mxu0 }
 0x362   : > { %v3841_v11 = vpop.f32.mrb[111].mxu0  ;;  %v6422_v1 = vadd.f32 %v6332_v28, %v3930_v50 }
 0x363   : > { %v6425_v14 = vadd.f32 %v3839_v7, %v6324_v46  ;;  %v3842_v17 = vadd.f32 %v3841_v11, %v3840_v35 }
 0x364   : > { %v3931_v44 = vpop.f32.mrb[112].mxu1 }
 0x365   : > { %v6428_v62 = vadd.f32 %v3842_v17, %v6326_v3  ;;  %v3932_v33 = vpop.f32.mrb[113].mxu1 }
 0x366   : > { %v3933_v61 = vadd.f32 %v3932_v33, %v3931_v44  ;;  %v3934_v26 = vpop.f32.mrb[114].mxu1 }
 0x367   : > { %v3935_v5 = vpop.f32.mrb[115].mxu1 }
 0x368   : > { %v3936_v30 = vadd.f32 %v3935_v5, %v3934_v26  ;;  %v6431_v59 = vadd.f32 %v6341_v18, %v3933_v61 }
 0x36a   : > { %v6434_v45 = vadd.f32 %v6344_v58, %v3936_v30 }
 0x36c   : > { %v3937_v28 = vpop.f32.mrb[116].mxu1 }
 0x36d   : > { %v3938_v63 = vpop.f32.mrb[117].mxu1 }
 0x36e   : > { %v3939_v46 = vadd.f32 %v3938_v63, %v3937_v28  ;;  %v3940_v8 = vpop.f32.mrb[118].mxu1 }
 0x36f   : > { %v3941_v19 = vpop.f32.mrb[119].mxu1 }
 0x370   : > { %v3942_v51 = vadd.f32 %v3941_v19, %v3940_v8  ;;  %v6437_v3 = vadd.f32 %v6353_v42, %v3939_v46 }
 0x372   : > { %v6440_v10 = vadd.f32 %v6356_v48, %v3942_v51 }
 0x374   : > { %v3943_v43 = vpop.f32.mrb[120].mxu1 }
 0x375   : > { %v3944_v12 = vpop.f32.mrb[121].mxu1 }
 0x376   : > { %v3945_v34 = vadd.f32 %v3944_v12, %v3943_v43  ;;  %v3946_v18 = vpop.f32.mrb[122].mxu1 }
 0x377   : > { %v3947_v32 = vpop.f32.mrb[123].mxu1 }
 0x378   : > { %v3948_v16 = vadd.f32 %v3947_v32, %v3946_v18  ;;  %v6443_v58 = vadd.f32 %v6365_v60, %v3945_v34 }
 0x37a   : > { %v6446_v21 = vadd.f32 %v6368_v4, %v3948_v16 }
 0x37c   : > { %v3949_v0 = vpop.f32.mrb[124].mxu1 }
 0x37d   : > { %v3950_v57 = vpop.f32.mrb[125].mxu1 }
 0x37e   : > { %v3951_v55 = vadd.f32 %v3950_v57, %v3949_v0  ;;  %v3952_v42 = vpop.f32.mrb[126].mxu1 }
 0x37f   : > { %v3953_v24 = vpop.f32.mrb[127].mxu1 }
 0x380   : > { %v3954_v52 = vadd.f32 %v3953_v24, %v3952_v42  ;;  %v6449_v48 = vadd.f32 %v6377_v37, %v3951_v55  ;;  %v6478_v42 = vld [vmem:[#allocation11] ss:$0 sm:$0xff] }
 0x382   : > { %v6452_v50 = vadd.f32 %v6380_v13, %v3954_v52 }
 0x384   : > { %v3955_v7 = vpop.f32.mrb[128].mxu1 }
 0x385   : > { %v3956_v35 = vpop.f32.mrb[129].mxu1 }
 0x386   : > { %v3957_v11 = vadd.f32 %v3956_v35, %v3955_v7  ;;  %v3958_v60 = vpop.f32.mrb[130].mxu1 }
 0x387   : > { %v3959_v17 = vpop.f32.mrb[131].mxu1 }
 0x388   : > { %v3960_v44 = vadd.f32 %v3959_v17, %v3958_v60  ;;  %v6455_v4 = vadd.f32 %v6389_v2, %v3957_v11 }
 0x38a   : > { %v6458_v33 = vadd.f32 %v6392_v36, %v3960_v44 }
 0x38c   : > { %v3961_v61 = vpop.f32.mrb[132].mxu1 }
 0x38d   : > { %v3962_v26 = vpop.f32.mrb[133].mxu1 }
 0x38e   : > { %v3963_v5 = vadd.f32 %v3962_v26, %v3961_v61  ;;  %v3964_v37 = vpop.f32.mrb[134].mxu1 }
 0x38f   : > { %v3965_v30 = vpop.f32.mrb[135].mxu1 }
 0x390   : > { %v3966_v28 = vadd.f32 %v3965_v30, %v3964_v37  ;;  %v6461_v13 = vadd.f32 %v6401_v40, %v3963_v5 }
 0x392   : > { %v6464_v63 = vadd.f32 %v6404_v27, %v3966_v28 }
 0x394   : > { %v3967_v46 = vpop.f32.mrb[136].mxu1 }
 0x395   : > { %v3968_v8 = vpop.f32.mrb[137].mxu1 }
 0x396   : > { %v3969_v19 = vadd.f32 %v3968_v8, %v3967_v46  ;;  %v3970_v2 = vpop.f32.mrb[138].mxu1 }
 0x397   : > { %v3971_v51 = vpop.f32.mrb[139].mxu1 }
 0x398   : > { %v3972_v43 = vadd.f32 %v3971_v51, %v3970_v2  ;;  %v6467_v36 = vadd.f32 %v6413_v9, %v3969_v19 }
 0x39a   : > { %v6470_v12 = vadd.f32 %v6416_v56, %v3972_v43 }
 0x39c   : > { %v3973_v34 = vpop.f32.mrb[140].mxu1 }
 0x39d   : > { %v3974_v18 = vpop.f32.mrb[141].mxu1 }
 0x39e   : > { %v3975_v32 = vadd.f32 %v3974_v18, %v3973_v34  ;;  %v3976_v40 = vpop.f32.mrb[142].mxu1 }
 0x39f   : > { %v3977_v16 = vpop.f32.mrb[143].mxu1 }
 0x3a0   : > { %v3978_v0 = vadd.f32 %v3977_v16, %v3976_v40  ;;  %v6473_v27 = vadd.f32 %v6425_v14, %v3975_v32 }
 0x3a2   : > { %v6476_v57 = vadd.f32 %v6428_v62, %v3978_v0 }
 0x3a7   : > { %v4189_v55 = vpop.f32.mrb[16].mxu0 }
 0x3a8   : > { %v4285_v9 = vadd.f32 %v6347_v54, %v4189_v55  ;;  %v2364_v24 = vpop.f32.mrb[17].mxu0 }
 0x3a9   : > { %v4288_v56 = vadd.f32 %v6335_v6, %v2364_v24  ;;  %v4190_v52 = vpop.f32.mrb[18].mxu0 }
 0x3aa   : > { %v2532_v7 = vadd.f32 %v4285_v9, %v6478_v42  ;;  %v4291_v35 = vadd.f32 %v6350_v31, %v4190_v52  ;;  %v2367_v11 = vpop.f32.mrb[19].mxu0 }
 0x3ab   : > { %v2530_v14 = vadd.f32 %v4288_v56, %v6478_v42  ;;  %v4294_v60 = vadd.f32 %v6338_v39, %v2367_v11 }
 0x3ac   : > { %v2533_v62 = vadd.f32 %v4291_v35, %v6478_v42  ;;  %v2564_v44 = vmax.f32 %v2532_v7, 0.0 }
 0x3ad   : > { %v2531_v17 = vadd.f32 %v4294_v60, %v6478_v42  ;;  %v2562_v54 = vmax.f32 %v2530_v14, 0.0 }
 0x3ae   : > { %v2565_v61 = vmax.f32 %v2533_v62, 0.0 }
 0x3af   : > { %v2563_v26 = vmax.f32 %v2531_v17, 0.0  ;;  %v4193_v5 = vpop.f32.mrb[20].mxu0 }
 0x3b0   : > { %v2595_v6 = vpack.c.bf16 %v2565_v61, %v2564_v44  ;;  %v4297_v37 = vadd.f32 %v6371_v15, %v4193_v5  ;;  %v2380_v30 = vpop.f32.mrb[21].mxu0 }
 0x3b1   : > { %v4300_v31 = vadd.f32 %v6359_v49, %v2380_v30  ;;  %v4194_v28 = vpop.f32.mrb[22].mxu0  ;;  %v2594_v46 = vpack.c.bf16 %v2563_v26, %v2562_v54 }
 0x3b2   : > { %v2536_v8 = vadd.f32 %v4297_v37, %v6478_v42  ;;  %v4303_v39 = vadd.f32 %v6374_v23, %v4194_v28  ;;  %v2383_v19 = vpop.f32.mrb[23].mxu0 }
 0x3b3   : > { %v2534_v2 = vadd.f32 %v4300_v31, %v6478_v42  ;;  %v4306_v51 = vadd.f32 %v6362_v20, %v2383_v19  ;;  %4235 = vmatprep.mubr.bf16.mxu1 %v2594_v46 }
 0x3b4   : > { %v2537_v43 = vadd.f32 %v4303_v39, %v6478_v42  ;;  %4236 = vmatmul.mubr.bf16.vlgmr.msra.gmra.mrb[144].mxu1 %v2595_v6  ;;  %v2568_v34 = vmax.f32 %v2536_v8, 0.0 }
 0x3b5   : > { %v2535_v15 = vadd.f32 %v4306_v51, %v6478_v42  ;;  %v2566_v49 = vmax.f32 %v2534_v2, 0.0 }
 0x3b6   : > { %v2569_v18 = vmax.f32 %v2537_v43, 0.0 }
 0x3b7   : > { %v2567_v32 = vmax.f32 %v2535_v15, 0.0  ;;  %v4197_v40 = vpop.f32.mrb[24].mxu0 }
 0x3b8   : > { %v4309_v16 = vadd.f32 %v6395_v41, %v4197_v40  ;;  %v2396_v0 = vpop.f32.mrb[25].mxu0  ;;  %v2597_v23 = vpack.c.bf16 %v2569_v18, %v2568_v34 }
 0x3b9   : > { %v4312_v55 = vadd.f32 %v6383_v38, %v2396_v0  ;;  %v4198_v9 = vpop.f32.mrb[26].mxu0  ;;  %v2596_v24 = vpack.c.bf16 %v2567_v32, %v2566_v49 }
 0x3ba   : > { %v2540_v20 = vadd.f32 %v4309_v16, %v6478_v42  ;;  %v4315_v56 = vadd.f32 %v6398_v25, %v4198_v9  ;;  %v2399_v52 = vpop.f32.mrb[27].mxu0 }
 0x3bb   : > { %v2538_v7 = vadd.f32 %v4312_v55, %v6478_v42  ;;  %v4318_v35 = vadd.f32 %v6386_v47, %v2399_v52  ;;  %4239 = vmatprep.mubr.bf16.mxu1 %v2596_v24 }
 0x3bc   : > { %v2541_v11 = vadd.f32 %v4315_v56, %v6478_v42  ;;  %4240 = vmatmul.mubr.bf16.gmra.mrb[148].mxu1 %v2597_v23  ;;  %v2572_v14 = vmax.f32 %v2540_v20, 0.0 }
 0x3bd   : > { %v2539_v41 = vadd.f32 %v4318_v35, %v6478_v42  ;;  %v2570_v38 = vmax.f32 %v2538_v7, 0.0 }
 0x3be   : > { %v2573_v60 = vmax.f32 %v2541_v11, 0.0 }
 0x3bf   : > { %v2571_v62 = vmax.f32 %v2539_v41, 0.0  ;;  %v4201_v17 = vpop.f32.mrb[28].mxu0 }
 0x3c0   : > { %v4321_v44 = vadd.f32 %v6419_v53, %v4201_v17  ;;  %v2412_v61 = vpop.f32.mrb[29].mxu0  ;;  %v2599_v25 = vpack.c.bf16 %v2573_v60, %v2572_v14 }
 0x3c1   : > { %v4324_v54 = vadd.f32 %v6407_v29, %v2412_v61  ;;  %v4202_v26 = vpop.f32.mrb[30].mxu0  ;;  %v2598_v5 = vpack.c.bf16 %v2571_v62, %v2570_v38 }
 0x3c2   : > { %v2544_v47 = vadd.f32 %v4321_v44, %v6478_v42  ;;  %v4327_v6 = vadd.f32 %v6422_v1, %v4202_v26  ;;  %v2415_v37 = vpop.f32.mrb[31].mxu0 }
 0x3c3   : > { %v2542_v30 = vadd.f32 %v4324_v54, %v6478_v42  ;;  %v4330_v31 = vadd.f32 %v6410_v22, %v2415_v37  ;;  %4243 = vmatprep.mubr.bf16.mxu1 %v2598_v5 }
 0x3c4   : > { %v2545_v28 = vadd.f32 %v4327_v6, %v6478_v42  ;;  %4244 = vmatmul.mubr.bf16.gmra.mrb[152].mxu1 %v2599_v25  ;;  %v2576_v46 = vmax.f32 %v2544_v47, 0.0 }
 0x3c5   : > { %v2543_v53 = vadd.f32 %v4330_v31, %v6478_v42  ;;  %v2574_v29 = vmax.f32 %v2542_v30, 0.0 }
 0x3c6   : > { %v2577_v8 = vmax.f32 %v2545_v28, 0.0 }
 0x3c7   : > { %v2575_v39 = vmax.f32 %v2543_v53, 0.0  ;;  %v4205_v19 = vpop.f32.mrb[32].mxu0 }
 0x3c8   : > { %v4333_v2 = vadd.f32 %v6437_v3, %v4205_v19  ;;  %v2428_v51 = vpop.f32.mrb[33].mxu0  ;;  %v2601_v1 = vpack.c.bf16 %v2577_v8, %v2576_v46 }
 0x3c9   : > { %v4336_v43 = vadd.f32 %v6431_v59, %v2428_v51  ;;  %v4206_v15 = vpop.f32.mrb[34].mxu0  ;;  %v2600_v34 = vpack.c.bf16 %v2575_v39, %v2574_v29 }
 0x3ca   : > { %v2548_v22 = vadd.f32 %v4333_v2, %v6478_v42  ;;  %v4339_v18 = vadd.f32 %v6440_v10, %v4206_v15  ;;  %v2431_v49 = vpop.f32.mrb[35].mxu0 }
 0x3cb   : > { %v2546_v32 = vadd.f32 %v4336_v43, %v6478_v42  ;;  %v4342_v40 = vadd.f32 %v6434_v45, %v2431_v49  ;;  %4247 = vmatprep.mubr.bf16.mxu1 %v2600_v34 }
 0x3cc   : > { %v2549_v16 = vadd.f32 %v4339_v18, %v6478_v42  ;;  %4248 = vmatmul.mubr.bf16.gmra.mrb[156].mxu1 %v2601_v1  ;;  %v2580_v0 = vmax.f32 %v2548_v22, 0.0 }
 0x3cd   : > { %v2547_v3 = vadd.f32 %v4342_v40, %v6478_v42  ;;  %v2578_v59 = vmax.f32 %v2546_v32, 0.0 }
 0x3ce   : > { %v2581_v23 = vmax.f32 %v2549_v16, 0.0 }
 0x3cf   : > { %v2579_v55 = vmax.f32 %v2547_v3, 0.0  ;;  %v4209_v9 = vpop.f32.mrb[36].mxu0 }
 0x3d0   : > { %v4345_v24 = vadd.f32 %v6449_v48, %v4209_v9  ;;  %v2444_v20 = vpop.f32.mrb[37].mxu0  ;;  %v2603_v10 = vpack.c.bf16 %v2581_v23, %v2580_v0 }
 0x3d1   : > { %v4348_v56 = vadd.f32 %v6443_v58, %v2444_v20  ;;  %v4210_v52 = vpop.f32.mrb[38].mxu0  ;;  %v2602_v7 = vpack.c.bf16 %v2579_v55, %v2578_v59  ;;  %v4646_v59 = vld [vmem:[%s5283_s29 + $0x10] sm:$0xff]  ;;  %v4647_v20 = vld [vmem:[%s5283_s29] sm:$0xff] }
 0x3d2   : > { %v2552_v45 = vadd.f32 %v4345_v24, %v6478_v42  ;;  %v4351_v35 = vadd.f32 %v6452_v50, %v4210_v52  ;;  %v2447_v11 = vpop.f32.mrb[39].mxu0 }
 0x3d3   : > { %v2550_v41 = vadd.f32 %v4348_v56, %v6478_v42  ;;  %v4354_v14 = vadd.f32 %v6446_v21, %v2447_v11  ;;  %4251 = vmatprep.mubr.bf16.mxu1 %v2602_v7  ;;  %v4648_v7 = vld [vmem:[%s5283_s29 + $0x18] sm:$0xff]  ;;  %v4649_v11 = vld [vmem:[%s5283_s29 + $0x8] sm:$0xff] }
 0x3d4   : > { %v2553_v60 = vadd.f32 %v4351_v35, %v6478_v42  ;;  %4252 = vmatmul.mubr.bf16.gmra.mrb[160].mxu1 %v2603_v10  ;;  %v2584_v38 = vmax.f32 %v2552_v45, 0.0 }
 0x3d5   : > { %v2551_v48 = vadd.f32 %v4354_v14, %v6478_v42  ;;  %v2582_v58 = vmax.f32 %v2550_v41, 0.0 }
 0x3d6   : > { %v2585_v62 = vmax.f32 %v2553_v60, 0.0 }
 0x3d7   : > { %v2583_v17 = vmax.f32 %v2551_v48, 0.0  ;;  %v4213_v44 = vpop.f32.mrb[40].mxu0 }
 0x3d8   : > { %v4357_v61 = vadd.f32 %v6461_v13, %v4213_v44  ;;  %v2460_v25 = vpop.f32.mrb[41].mxu0  ;;  %v2605_v50 = vpack.c.bf16 %v2585_v62, %v2584_v38  ;;  %v4650_v44 = vld [vmem:[%s5283_s29 + $0x30] sm:$0xff] }
 0x3d9   : > { %v4360_v54 = vadd.f32 %v6455_v4, %v2460_v25  ;;  %v4214_v26 = vpop.f32.mrb[42].mxu0  ;;  %v2604_v5 = vpack.c.bf16 %v2583_v17, %v2582_v58 }
 0x3da   : > { %v2556_v21 = vadd.f32 %v4357_v61, %v6478_v42  ;;  %v4363_v47 = vadd.f32 %v6464_v63, %v4214_v26  ;;  %v2463_v6 = vpop.f32.mrb[43].mxu0 }
 0x3db   : > { %v2554_v37 = vadd.f32 %v4360_v54, %v6478_v42  ;;  %v4366_v30 = vadd.f32 %v6458_v33, %v2463_v6  ;;  %4255 = vmatprep.mubr.bf16.mxu1 %v2604_v5  ;;  %v4651_v54 = vld [vmem:[%s5283_s29 + $0x20] sm:$0xff] }
 0x3dc   : > { %v2557_v31 = vadd.f32 %v4363_v47, %v6478_v42  ;;  %4256 = vmatmul.mubr.bf16.gmra.mrb[164].mxu1 %v2605_v50  ;;  %v2588_v28 = vmax.f32 %v2556_v21, 0.0  ;;  %v4652_v47 = vld [vmem:[%s5283_s29 + $0x38] sm:$0xff] }
 0x3dd   : > { %v2555_v13 = vadd.f32 %v4366_v30, %v6478_v42  ;;  %v2586_v4 = vmax.f32 %v2554_v37, 0.0  ;;  %v4653_v30 = vld [vmem:[%s5283_s29 + $0x28] sm:$0xff] }
 0x3de   : > { %v2589_v53 = vmax.f32 %v2557_v31, 0.0 }
 0x3df   : > { %v2587_v46 = vmax.f32 %v2555_v13, 0.0  ;;  %v4217_v8 = vpop.f32.mrb[44].mxu0 }
 0x3e0   : > { %v4369_v29 = vadd.f32 %v6473_v27, %v4217_v8  ;;  %v2476_v39 = vpop.f32.mrb[45].mxu0  ;;  %v2607_v63 = vpack.c.bf16 %v2589_v53, %v2588_v28 }
 0x3e1   : > { %v4372_v19 = vadd.f32 %v6467_v36, %v2476_v39  ;;  %v4218_v2 = vpop.f32.mrb[46].mxu0  ;;  %v2606_v51 = vpack.c.bf16 %v2587_v46, %v2586_v4  ;;  %v4654_v39 = vld [vmem:[%s5283_s29 + $0x50] sm:$0xff] }
 0x3e2   : > { %v2560_v33 = vadd.f32 %v4369_v29, %v6478_v42  ;;  %v4375_v1 = vadd.f32 %v6476_v57, %v4218_v2  ;;  %v2479_v43 = vpop.f32.mrb[47].mxu0  ;;  %v6544_v57 = vld [vmem:[#allocation13] ss:$0 sm:$0xff] }
 0x3e3   : > { %v2558_v15 = vadd.f32 %v4372_v19, %v6478_v42  ;;  %v4378_v34 = vadd.f32 %v6470_v12, %v2479_v43  ;;  %4259 = vmatprep.mubr.bf16.mxu1 %v2606_v51  ;;  %v4655_v51 = vld [vmem:[%s5283_s29 + $0x40] sm:$0xff] }
 0x3e4   : > { %v2561_v22 = vadd.f32 %v4375_v1, %v6478_v42  ;;  %4260 = vmatmul.mubr.bf16.gmra.mrb[168].mxu1 %v2607_v63  ;;  %v2592_v18 = vmax.f32 %v2560_v33, 0.0 }
 0x3e5   : > { %v2559_v27 = vadd.f32 %v4378_v34, %v6478_v42  ;;  %v2590_v49 = vmax.f32 %v2558_v15, 0.0  ;;  %v4656_v15 = vld [vmem:[%s5283_s29 + $0x58] sm:$0xff] }
 0x3e6   : > { %v2593_v36 = vmax.f32 %v2561_v22, 0.0 }
 0x3e7   : > { %v2591_v32 = vmax.f32 %v2559_v27, 0.0  ;;  %v4657_v27 = vld [vmem:[%s5283_s29 + $0x48] sm:$0xff] }
 0x3e8   : > { %v2609_v40 = vpack.c.bf16 %v2593_v36, %v2592_v18 }
 0x3e9   : > { %v2608_v16 = vpack.c.bf16 %v2591_v32, %v2590_v49 }
 0x3eb   : > { %4263 = vmatprep.mubr.bf16.mxu1 %v2608_v16 }
 0x3ec   : > { %4264 = vmatmul.mubr.bf16.gmra.mrb[172].mxu1 %v2609_v40 }
 0x487   : > { %v4237_v12 = vpop.f32.mrb[144].mxu1 }
 0x488   : > { %v2724_v3 = vadd.f32 %v4237_v12, %v6544_v57  ;;  %v2715_v0 = vpop.f32.mrb[145].mxu1 }
 0x489   : > { %v2716_v42 = vadd.f32 %v6544_v57, %v2715_v0  ;;  %v4238_v23 = vpop.f32.mrb[146].mxu1  ;;  %v4658_v0 = vld [vmem:[%s5283_s29 + $0x70] sm:$0xff] }
 0x48a   : > { %v2844_v55 = vadd.f32 %v4646_v59, %v2724_v3  ;;  %v2727_v9 = vadd.f32 %v4238_v23, %v6544_v57  ;;  %v2718_v24 = vpop.f32.mrb[147].mxu1 }
 0x48b   : > { %v2842_v10 = vadd.f32 %v4647_v20, %v2716_v42  ;;  %v2719_v56 = vadd.f32 %v6544_v57, %v2718_v24 }
 0x48c   : > { %v2876_v52 = vmax.f32 %v2844_v55, 0.0  ;;  %v2845_v45 = vadd.f32 %v4648_v7, %v2727_v9  ;;  %v4659_v55 = vld [vmem:[%s5283_s29 + $0x60] sm:$0xff]  ;;  %v4661_v7 = vld [vmem:[%s5283_s29 + $0x68] sm:$0xff] }
 0x48d   : > { %v2874_v35 = vmax.f32 %v2842_v10, 0.0  ;;  %v2843_v41 = vadd.f32 %v4649_v11, %v2719_v56  ;;  %v4660_v10 = vld [vmem:[%s5283_s29 + $0x78] sm:$0xff] }
 0x48e   : > { %2908 = vst [vmem:[%s6556_s8 + $0x10] sm:$0xff] %v2876_v52  ;;  %v2877_v14 = vmax.f32 %v2845_v45, 0.0 }
 0x48f   : > { %2906 = vst [vmem:[%s6556_s8] sm:$0xff] %v2874_v35  ;;  %v2875_v60 = vmax.f32 %v2843_v41, 0.0  ;;  %v4241_v48 = vpop.f32.mrb[148].mxu1 }
 0x490   : > { %2909 = vst [vmem:[%s6556_s8 + $0x18] sm:$0xff] %v2877_v14  ;;  %v2740_v38 = vadd.f32 %v4241_v48, %v6544_v57  ;;  %v2731_v62 = vpop.f32.mrb[149].mxu1 }
 0x491   : > { %2907 = vst [vmem:[%s6556_s8 + $0x8] sm:$0xff] %v2875_v60  ;;  %v2732_v58 = vadd.f32 %v6544_v57, %v2731_v62  ;;  %v4242_v17 = vpop.f32.mrb[150].mxu1  ;;  %v4662_v62 = vld [vmem:[%s5283_s29 + $0x90] sm:$0xff] }
 0x492   : > { %v2848_v61 = vadd.f32 %v4650_v44, %v2740_v38  ;;  %v2743_v25 = vadd.f32 %v4242_v17, %v6544_v57  ;;  %v2734_v50 = vpop.f32.mrb[151].mxu1 }
 0x493   : > { %v2846_v26 = vadd.f32 %v4651_v54, %v2732_v58  ;;  %v2735_v5 = vadd.f32 %v6544_v57, %v2734_v50 }
 0x494   : > { %v2880_v21 = vmax.f32 %v2848_v61, 0.0  ;;  %v2849_v6 = vadd.f32 %v4652_v47, %v2743_v25  ;;  %v4663_v61 = vld [vmem:[%s5283_s29 + $0x80] sm:$0xff]  ;;  %v4665_v47 = vld [vmem:[%s5283_s29 + $0x88] sm:$0xff] }
 0x495   : > { %v2878_v37 = vmax.f32 %v2846_v26, 0.0  ;;  %v2847_v31 = vadd.f32 %v4653_v30, %v2735_v5  ;;  %v4664_v26 = vld [vmem:[%s5283_s29 + $0x98] sm:$0xff] }
 0x496   : > { %2912 = vst [vmem:[%s6556_s8 + $0x30] sm:$0xff] %v2880_v21  ;;  %v2881_v13 = vmax.f32 %v2849_v6, 0.0 }
 0x497   : > { %2910 = vst [vmem:[%s6556_s8 + $0x20] sm:$0xff] %v2878_v37  ;;  %v2879_v28 = vmax.f32 %v2847_v31, 0.0  ;;  %v4245_v53 = vpop.f32.mrb[152].mxu1 }
 0x498   : > { %2913 = vst [vmem:[%s6556_s8 + $0x38] sm:$0xff] %v2881_v13  ;;  %v2756_v4 = vadd.f32 %v4245_v53, %v6544_v57  ;;  %v2747_v46 = vpop.f32.mrb[153].mxu1 }
 0x499   : > { %2911 = vst [vmem:[%s6556_s8 + $0x28] sm:$0xff] %v2879_v28  ;;  %v2748_v8 = vadd.f32 %v6544_v57, %v2747_v46  ;;  %v4246_v29 = vpop.f32.mrb[154].mxu1  ;;  %v4666_v46 = vld [vmem:[%s5283_s29 + $0xb0] sm:$0xff] }
 0x49a   : > { %v2852_v63 = vadd.f32 %v4654_v39, %v2756_v4  ;;  %v2759_v19 = vadd.f32 %v4246_v29, %v6544_v57  ;;  %v2750_v2 = vpop.f32.mrb[155].mxu1 }
 0x49b   : > { %v2850_v33 = vadd.f32 %v4655_v51, %v2748_v8  ;;  %v2751_v1 = vadd.f32 %v6544_v57, %v2750_v2 }
 0x49c   : > { %v2884_v43 = vmax.f32 %v2852_v63, 0.0  ;;  %v2853_v34 = vadd.f32 %v4656_v15, %v2759_v19  ;;  %v4667_v63 = vld [vmem:[%s5283_s29 + $0xa0] sm:$0xff]  ;;  %v4669_v15 = vld [vmem:[%s5283_s29 + $0xa8] sm:$0xff] }
 0x49d   : > { %v2882_v22 = vmax.f32 %v2850_v33, 0.0  ;;  %v2851_v18 = vadd.f32 %v4657_v27, %v2751_v1  ;;  %v4668_v33 = vld [vmem:[%s5283_s29 + $0xb8] sm:$0xff] }
 0x49e   : > { %2916 = vst [vmem:[%s6556_s8 + $0x50] sm:$0xff] %v2884_v43  ;;  %v2885_v36 = vmax.f32 %v2853_v34, 0.0 }
 0x49f   : > { %2914 = vst [vmem:[%s6556_s8 + $0x40] sm:$0xff] %v2882_v22  ;;  %v2883_v49 = vmax.f32 %v2851_v18, 0.0  ;;  %v4249_v32 = vpop.f32.mrb[156].mxu1 }
 0x4a0   : > { %2917 = vst [vmem:[%s6556_s8 + $0x58] sm:$0xff] %v2885_v36  ;;  %v2772_v40 = vadd.f32 %v4249_v32, %v6544_v57  ;;  %v2763_v16 = vpop.f32.mrb[157].mxu1 }
 0x4a1   : > { %2915 = vst [vmem:[%s6556_s8 + $0x48] sm:$0xff] %v2883_v49  ;;  %v2764_v12 = vadd.f32 %v6544_v57, %v2763_v16  ;;  %v4250_v3 = vpop.f32.mrb[158].mxu1  ;;  %v4670_v16 = vld [vmem:[%s5283_s29 + $0xd0] sm:$0xff] }
 0x4a2   : > { %v2856_v42 = vadd.f32 %v4658_v0, %v2772_v40  ;;  %v2775_v23 = vadd.f32 %v4250_v3, %v6544_v57  ;;  %v2766_v59 = vpop.f32.mrb[159].mxu1 }
 0x4a3   : > { %v2854_v9 = vadd.f32 %v4659_v55, %v2764_v12  ;;  %v2767_v24 = vadd.f32 %v6544_v57, %v2766_v59 }
 0x4a4   : > { %v2888_v20 = vmax.f32 %v2856_v42, 0.0  ;;  %v2857_v56 = vadd.f32 %v4660_v10, %v2775_v23  ;;  %v4671_v42 = vld [vmem:[%s5283_s29 + $0xc0] sm:$0xff]  ;;  %v4673_v10 = vld [vmem:[%s5283_s29 + $0xc8] sm:$0xff] }
 0x4a5   : > { %v2886_v52 = vmax.f32 %v2854_v9, 0.0  ;;  %v2855_v45 = vadd.f32 %v4661_v7, %v2767_v24  ;;  %v4672_v9 = vld [vmem:[%s5283_s29 + $0xd8] sm:$0xff] }
 0x4a6   : > { %2920 = vst [vmem:[%s6556_s8 + $0x70] sm:$0xff] %v2888_v20  ;;  %v2889_v35 = vmax.f32 %v2857_v56, 0.0 }
 0x4a7   : > { %2918 = vst [vmem:[%s6556_s8 + $0x60] sm:$0xff] %v2886_v52  ;;  %v2887_v11 = vmax.f32 %v2855_v45, 0.0  ;;  %v4253_v41 = vpop.f32.mrb[160].mxu1 }
 0x4a8   : > { %2921 = vst [vmem:[%s6556_s8 + $0x78] sm:$0xff] %v2889_v35  ;;  %v2788_v14 = vadd.f32 %v4253_v41, %v6544_v57  ;;  %v2779_v60 = vpop.f32.mrb[161].mxu1 }
 0x4a9   : > { %2919 = vst [vmem:[%s6556_s8 + $0x68] sm:$0xff] %v2887_v11  ;;  %v2780_v48 = vadd.f32 %v6544_v57, %v2779_v60  ;;  %v4254_v38 = vpop.f32.mrb[162].mxu1  ;;  %v4674_v60 = vld [vmem:[%s5283_s29 + $0xf0] sm:$0xff] }
 0x4aa   : > { %v2860_v58 = vadd.f32 %v4662_v62, %v2788_v14  ;;  %v2791_v17 = vadd.f32 %v4254_v38, %v6544_v57  ;;  %v2782_v44 = vpop.f32.mrb[163].mxu1 }
 0x4ab   : > { %v2858_v25 = vadd.f32 %v4663_v61, %v2780_v48  ;;  %v2783_v50 = vadd.f32 %v6544_v57, %v2782_v44 }
 0x4ac   : > { %v2892_v54 = vmax.f32 %v2860_v58, 0.0  ;;  %v2861_v5 = vadd.f32 %v4664_v26, %v2791_v17  ;;  %v4675_v58 = vld [vmem:[%s5283_s29 + $0xe0] sm:$0xff]  ;;  %v4677_v26 = vld [vmem:[%s5283_s29 + $0xe8] sm:$0xff] }
 0x4ad   : > { %v2890_v21 = vmax.f32 %v2858_v25, 0.0  ;;  %v2859_v6 = vadd.f32 %v4665_v47, %v2783_v50  ;;  %v4676_v25 = vld [vmem:[%s5283_s29 + $0xf8] sm:$0xff] }
 0x4ae   : > { %2924 = vst [vmem:[%s6556_s8 + $0x90] sm:$0xff] %v2892_v54  ;;  %v2893_v37 = vmax.f32 %v2861_v5, 0.0 }
 0x4af   : > { %2922 = vst [vmem:[%s6556_s8 + $0x80] sm:$0xff] %v2890_v21  ;;  %v2891_v30 = vmax.f32 %v2859_v6, 0.0  ;;  %v4257_v31 = vpop.f32.mrb[164].mxu1 }
 0x4b0   : > { %2925 = vst [vmem:[%s6556_s8 + $0x98] sm:$0xff] %v2893_v37  ;;  %v2804_v13 = vadd.f32 %v4257_v31, %v6544_v57  ;;  %v2795_v28 = vpop.f32.mrb[165].mxu1 }
 0x4b1   : > { %2923 = vst [vmem:[%s6556_s8 + $0x88] sm:$0xff] %v2891_v30  ;;  %v2796_v53 = vadd.f32 %v6544_v57, %v2795_v28  ;;  %v4258_v4 = vpop.f32.mrb[166].mxu1 }
 0x4b2   : > { %v2864_v8 = vadd.f32 %v4666_v46, %v2804_v13  ;;  %v2807_v29 = vadd.f32 %v4258_v4, %v6544_v57  ;;  %v2798_v39 = vpop.f32.mrb[167].mxu1 }
 0x4b3   : > { %v2862_v19 = vadd.f32 %v4667_v63, %v2796_v53  ;;  %v2799_v2 = vadd.f32 %v6544_v57, %v2798_v39 }
 0x4b4   : > { %v2896_v51 = vmax.f32 %v2864_v8, 0.0  ;;  %v2865_v1 = vadd.f32 %v4668_v33, %v2807_v29 }
 0x4b5   : > { %v2894_v43 = vmax.f32 %v2862_v19, 0.0  ;;  %v2863_v34 = vadd.f32 %v4669_v15, %v2799_v2 }
 0x4b6   : > { %2928 = vst [vmem:[%s6556_s8 + $0xb0] sm:$0xff] %v2896_v51  ;;  %v2897_v22 = vmax.f32 %v2865_v1, 0.0 }
 0x4b7   : > { %2926 = vst [vmem:[%s6556_s8 + $0xa0] sm:$0xff] %v2894_v43  ;;  %v2895_v27 = vmax.f32 %v2863_v34, 0.0  ;;  %v4261_v18 = vpop.f32.mrb[168].mxu1 }
 0x4b8   : > { %2929 = vst [vmem:[%s6556_s8 + $0xb8] sm:$0xff] %v2897_v22  ;;  %v2820_v36 = vadd.f32 %v4261_v18, %v6544_v57  ;;  %v2811_v49 = vpop.f32.mrb[169].mxu1 }
 0x4b9   : > { %2927 = vst [vmem:[%s6556_s8 + $0xa8] sm:$0xff] %v2895_v27  ;;  %v2812_v32 = vadd.f32 %v6544_v57, %v2811_v49  ;;  %v4262_v40 = vpop.f32.mrb[170].mxu1 }
 0x4ba   : > { %v2868_v12 = vadd.f32 %v4670_v16, %v2820_v36  ;;  %v2823_v3 = vadd.f32 %v4262_v40, %v6544_v57  ;;  %v2814_v0 = vpop.f32.mrb[171].mxu1 }
 0x4bb   : > { %v2866_v23 = vadd.f32 %v4671_v42, %v2812_v32  ;;  %v2815_v59 = vadd.f32 %v6544_v57, %v2814_v0 }
 0x4bc   : > { %v2900_v55 = vmax.f32 %v2868_v12, 0.0  ;;  %v2869_v24 = vadd.f32 %v4672_v9, %v2823_v3 }
 0x4bd   : > { %v2898_v20 = vmax.f32 %v2866_v23, 0.0  ;;  %v2867_v56 = vadd.f32 %v4673_v10, %v2815_v59 }
 0x4be   : > { %2932 = vst [vmem:[%s6556_s8 + $0xd0] sm:$0xff] %v2900_v55  ;;  %v2901_v52 = vmax.f32 %v2869_v24, 0.0 }
 0x4bf   : > { %2930 = vst [vmem:[%s6556_s8 + $0xc0] sm:$0xff] %v2898_v20  ;;  %v2899_v7 = vmax.f32 %v2867_v56, 0.0  ;;  %v4265_v45 = vpop.f32.mrb[172].mxu1 }
 0x4c0   : > { %2933 = vst [vmem:[%s6556_s8 + $0xd8] sm:$0xff] %v2901_v52  ;;  %v2836_v35 = vadd.f32 %v4265_v45, %v6544_v57  ;;  %v2827_v11 = vpop.f32.mrb[173].mxu1 }
 0x4c1   : > { %2931 = vst [vmem:[%s6556_s8 + $0xc8] sm:$0xff] %v2899_v7  ;;  %v2828_v41 = vadd.f32 %v6544_v57, %v2827_v11  ;;  %v4266_v14 = vpop.f32.mrb[174].mxu1 }
 0x4c2   : > { %v2872_v48 = vadd.f32 %v4674_v60, %v2836_v35  ;;  %v2839_v38 = vadd.f32 %v4266_v14, %v6544_v57  ;;  %v2830_v62 = vpop.f32.mrb[175].mxu1 }
 0x4c3   : > { %v2870_v17 = vadd.f32 %v4675_v58, %v2828_v41  ;;  %v2831_v44 = vadd.f32 %v6544_v57, %v2830_v62 }
 0x4c4   : > { %v2904_v61 = vmax.f32 %v2872_v48, 0.0  ;;  %v2873_v50 = vadd.f32 %v4676_v25, %v2839_v38 }
 0x4c5   : > { %v2902_v54 = vmax.f32 %v2870_v17, 0.0  ;;  %v2871_v5 = vadd.f32 %v4677_v26, %v2831_v44 }
 0x4c6   : > { %2936 = vst [vmem:[%s6556_s8 + $0xf0] sm:$0xff] %v2904_v61  ;;  %v2905_v21 = vmax.f32 %v2873_v50, 0.0 }
 0x4c7   : > { %2934 = vst [vmem:[%s6556_s8 + $0xe0] sm:$0xff] %v2902_v54  ;;  %v2903_v57 = vmax.f32 %v2871_v5, 0.0 }
 0x4c8   : > { %2937 = vst [vmem:[%s6556_s8 + $0xf8] sm:$0xff] %v2905_v21 }
 0x4c9   : > { %2935 = vst [vmem:[%s6556_s8 + $0xe8] sm:$0xff] %v2903_v57 }
 0x4ca   : > { %4889 = shalt.err (!%p4886_p8)
}
 0x4cb   : > { %s4890_s15 = scalar_lea.hbm %s6648_s28, 4096  ;;  %s4894_s8 = scalar_lea.hbm %s6704_s7, 8192 }
 0x4cc   : > { %p4891_p4 = scmp.ne.s32.totalorder %s6648_s28, %s4890_s15  ;;  %p4895_p3 = scmp.lt.u32.totalorder %s6648_s28, %s6704_s7 }
 0x4cd   : > { %p4896_p5 = scmp.lt.u32.totalorder %s4894_s8, %s4890_s15  ;;  %p4898_p6 = scmp.lt.u32.totalorder %s4890_s15, %s6648_s28 }
 0x4ce   : > { %p4892_p10 = pnand %p4891_p4, %p6792_p9 }
 0x4cf   : > { %p4897_p7 = por %p4896_p5, %p4895_p3 }
 0x4d0   : > { %p4893_p11 = pneg %p4892_p10 }
 0x4d1   : > { %p4899_p12 = por %p4898_p6, %p4897_p7 }
 0x4d3   : > { %p4900_p1 = pnand %p4899_p12, %p4893_p11 }
 0x4d5   : > { %4903 = shalt.err (!%p4900_p1)
}
 0x4d6   : > { %s4970_s19 = smov 128   ;;  %s4971_s18 = smov 8  }
 0x4d7   : > { %4469 = dma.vmem_to_hbm [thread:$0]  (%p6792_p9), %s6650_s21, 4096, %s6648_s28, %s2939_s30, %s4970_s19, %s4970_s19, %s4971_s18  }
 0x4d8 PF: > { %s2967_s20 = sand.u32 1, %s4942_s24   ;;  %p6793_p13 = scmp.ne.s32.totalorder %s6723_s17, 0 }
 0x4d9   : > { %p6794_p0 = scmp.ge.s32.totalorder %s4954_s27, 2  ;;  %s2968_s12 = scalar_lea.sflag [#allocation4], %s2967_s20 }
 0x4db   : > { %p4495_p2 = pnand %p6794_p0, %p6793_p13 }
 0x4dd   : > { %4937 = dma.done.wait (!%p4495_p2), %s2968_s12, 4096  }
 0x4de   : > { %4939 = vsyncadd (!%p4495_p2), %s2968_s12, 4294963200  ;;  %p23_p8 = scmp.ge.s32.totalorder %s5198_s11, 4   ;;  %s6795_s24 = smov %s4946_s25 }
 0x4df   : > { %s6796_s25 = smov %s4950_s26  ;;  %s6797_s26 = smov %s5209_s13 }
 0x4e0   : > { %s6798_s27 = smov %s5198_s11  ;;  %25 = sbr.rel (!%p23_p8) target bundleno = 8 (0x8), region = 119 }
 0x4e7   :  { %2973 = vsyncpa [#allocation3], 1 }
 0x4e8   :  { %2975 = vsyncpa [#allocation3 + $0x1], 1 }
 0x4e9   :  { %2976 = vsyncpa [#allocation6], 1 }
 0x4ea   :  { %2977 = vsyncpa [#allocation9], 1 }
 0x4eb   :  { %2978 = vsyncpa [#allocation12], 1 }
 0x4ec   :  { %2979 = vsyncpa [#allocation4], 1 }
 0x4ed   :  { %2981 = vsyncpa [#allocation4 + $0x1], 1 }

</bundles_post_ra>
